<compile_context>
chip_gen: v5e
topology: v5e:2x2
jax: 0.10.0
libtpu: 0.0.40
codegen_flags: <defaults>
</compile_context>

<pallas_src>
from functools import partial

import jax
import jax.numpy as jnp
from jax.experimental import pallas as pl
from jax.experimental.pallas import tpu as pltpu

# Module hyper-parameters (from __init__ defaults).
ALPHA = 0.9
BETA = 0.85
ALPHARP = 0.65
WRP = 1.0
TAU_M = 1.0 / (1.0 - ALPHA)   # tau_m = 1/(1-alpha)
TAU_S = 1.0 / (1.0 - BETA)    # tau_s = 1/(1-beta)


def _lif_rec_seq_kernel(sin_ref, p0_ref, q0_ref, r0_ref, s0_ref,
                        pr0_ref, qr0_ref, wt_ref, wrt_ref, b_ref,
                        # outputs
                        s_seq_ref, u_seq_ref,
                        p_f_ref, q_f_ref, r_f_ref, pr_f_ref, qr_f_ref,
                        # VMEM scratch (state carried across time chunks)
                        p_sc, q_sc, r_sc, s_sc, pr_sc, qr_sc,
                        *, ts, bt):
    tc = pl.program_id(1)          # time-chunk index (innermost, sequential)

    @pl.when(tc == 0)
    def _init():
        p_sc[...] = p0_ref[...]
        q_sc[...] = q0_ref[...]
        r_sc[...] = r0_ref[...]
        s_sc[...] = s0_ref[...]
        pr_sc[...] = pr0_ref[...]
        qr_sc[...] = qr0_ref[...]

    # ---- Phase 1: feed-forward traces (P, Q) over the chunk (VPU only). ----
    # No spike feedback here, so the chunk can be scanned up front.
    p, q = p_sc[...], q_sc[...]
    p_rows = []
    for tl in range(ts):                           # ts is static -> unrolled
        sin_t = sin_ref[tl]                        # (bt, n_in)
        q_new = BETA * q + TAU_S * sin_t
        p_new = ALPHA * p + TAU_M * q              # uses OLD Q (PyTorch order)
        p_rows.append(p_new)
        p, q = p_new, q_new
    p_sc[...] = p
    q_sc[...] = q

    # ---- Phase 2: ONE batched MXU pass for the chunk's feed-forward drive. --
    # (ts*bt, n_in) @ (n_in, n_out): M = ts*bt instead of M = bt per step.
    # TODO(synk): cast the dot operands to bf16 (keep preferred f32 accum) on
    # v6e/v7x once a spike-flip tolerance at the U>0 threshold is agreed.
    p_chunk = jnp.concatenate(p_rows, axis=0)                  # (ts*bt, n_in)
    u_ff = jnp.dot(p_chunk, wt_ref[...],
                   preferred_element_type=jnp.float32) + b_ref[...]

    # ---- Phase 3: serial recurrent part (small dot per step). ----
    r, s = r_sc[...], s_sc[...]
    pr, qr = pr_sc[...], qr_sc[...]
    for tl in range(ts):
        r_new = ALPHARP * r - WRP * s
        qr_new = BETA * qr + TAU_S * s             # driven by OLD spikes
        pr_new = ALPHA * pr + TAU_M * qr           # uses OLD Qr
        u = (u_ff[tl * bt:(tl + 1) * bt, :]
             + r_new
             + jnp.dot(pr_new, wrt_ref[...],
                       preferred_element_type=jnp.float32))
        s_new = (u > 0.0).astype(u.dtype)          # SurrGradSpike forward
        s_seq_ref[tl] = s_new
        u_seq_ref[tl] = u
        r, s, pr, qr = r_new, s_new, pr_new, qr_new
    r_sc[...] = r
    s_sc[...] = s
    pr_sc[...] = pr
    qr_sc[...] = qr

    @pl.when(tc == pl.num_programs(1) - 1)
    def _finalize():
        p_f_ref[...] = p
        q_f_ref[...] = q
        r_f_ref[...] = r
        pr_f_ref[...] = pr
        qr_f_ref[...] = qr


def _const_spec(shape):
    nd = len(shape)
    return pl.BlockSpec(shape, lambda b, t, _nd=nd: (0,) * _nd)


def _pick_time_chunk(T, target):
    ts = max(1, min(int(target), T))
    while T % ts:
        ts -= 1
    return ts


@partial(jax.jit, static_argnames=("ts_target", "batch_tile"))
def lif_rec_forward_seq(sin_seq, state, rec_state, w, b, wr, br,
                        *, ts_target=16, batch_tile=None):
    """Run LIFRecLayer.forward over a whole (T, B, n_in) spike sequence.

    state / rec_state: tuples (P, Q, R, S) matching the module's NeuronState.
    Returns (S_seq, U_seq, new_state, new_rec_state); S_seq/U_seq are
    (T, B, n_out) and the states are the post-sequence NeuronState tuples.
    """
    T, B, n_in = sin_seq.shape
    n_out = w.shape[0]
    f32 = jnp.float32

    bt = B if batch_tile is None else int(batch_tile)
    assert B % bt == 0 and (bt == B or bt % 8 == 0), \
        "batch_tile must divide B and be a multiple of 8 when < B"
    nb = B // bt
    ts = _pick_time_chunk(T, ts_target)
    nt = T // ts

    p0, q0, r0, s0 = state
    pr0, qr0, rr0, _ = rec_state

    # Invariant work hoisted out of the kernel (done once per call):
    #   * zero the recurrent self-connections (rec_mask),
    #   * pre-transpose both weights (no in-kernel .T / XLU transpose),
    #   * fold the two biases together.
    wr_masked = wr * (1.0 - jnp.eye(n_out, dtype=wr.dtype))
    w_t = w.T.astype(f32)                    # (n_in,  n_out)
    wr_t = wr_masked.T.astype(f32)           # (n_out, n_out)
    b_cat = (b + br).reshape(1, n_out).astype(f32)
    # TODO(synk): zero-pad n_in up to a multiple of 128 for a lane-aligned K
    # and store the weights as bf16 (with f32 accumulation) on v6e/v7x.

    out_shape = (
        jax.ShapeDtypeStruct((T, B, n_out), f32),   # S per step
        jax.ShapeDtypeStruct((T, B, n_out), f32),   # U per step
        jax.ShapeDtypeStruct((B, n_in), f32),       # final P
        jax.ShapeDtypeStruct((B, n_in), f32),       # final Q
        jax.ShapeDtypeStruct((B, n_out), f32),      # final R
        jax.ShapeDtypeStruct((B, n_out), f32),      # final Pr
        jax.ShapeDtypeStruct((B, n_out), f32),      # final Qr
    )

    in_specs = [
        pl.BlockSpec((ts, bt, n_in), lambda b, t: (t, b, 0)),   # Sin chunk
        pl.BlockSpec((bt, n_in), lambda b, t: (b, 0)),          # P0
        pl.BlockSpec((bt, n_in), lambda b, t: (b, 0)),          # Q0
        pl.BlockSpec((bt, n_out), lambda b, t: (b, 0)),         # R0
        pl.BlockSpec((bt, n_out), lambda b, t: (b, 0)),         # S0
        pl.BlockSpec((bt, n_out), lambda b, t: (b, 0)),         # Pr0
        pl.BlockSpec((bt, n_out), lambda b, t: (b, 0)),         # Qr0
        _const_spec((n_in, n_out)),                             # W^T
        _const_spec((n_out, n_out)),                            # Wr_masked^T
        _const_spec((1, n_out)),                                # b + br
    ]
    out_specs = [
        pl.BlockSpec((ts, bt, n_out), lambda b, t: (t, b, 0)),  # S seq chunk
        pl.BlockSpec((ts, bt, n_out), lambda b, t: (t, b, 0)),  # U seq chunk
        pl.BlockSpec((bt, n_in), lambda b, t: (b, 0)),          # final P
        pl.BlockSpec((bt, n_in), lambda b, t: (b, 0)),          # final Q
        pl.BlockSpec((bt, n_out), lambda b, t: (b, 0)),         # final R
        pl.BlockSpec((bt, n_out), lambda b, t: (b, 0)),         # final Pr
        pl.BlockSpec((bt, n_out), lambda b, t: (b, 0)),         # final Qr
    ]

    kernel = partial(_lif_rec_seq_kernel, ts=ts, bt=bt)

    outs = pl.pallas_call(
        kernel,
        out_shape=out_shape,
        grid_spec=pltpu.PrefetchScalarGridSpec(
            num_scalar_prefetch=0,
            grid=(nb, nt),                    # time axis innermost (sequential)
            in_specs=in_specs,
            out_specs=out_specs,
            scratch_shapes=[
                pltpu.VMEM((bt, n_in), f32),    # P
                pltpu.VMEM((bt, n_in), f32),    # Q
                pltpu.VMEM((bt, n_out), f32),   # R
                pltpu.VMEM((bt, n_out), f32),   # S
                pltpu.VMEM((bt, n_out), f32),   # Pr
                pltpu.VMEM((bt, n_out), f32),   # Qr
            ],
        ),
        compiler_params=pltpu.CompilerParams(
            dimension_semantics=("parallel", "arbitrary"),
            vmem_limit_bytes=32 * 1024 * 1024),
    )(sin_seq, p0, q0, r0, s0, pr0, qr0, w_t, wr_t, b_cat)

    s_seq, u_seq, p_f, q_f, r_f, pr_f, qr_f = outs
    s_f = s_seq[-1]
    new_state = (p_f, q_f, r_f, s_f)
    new_rec_state = (pr_f, qr_f, rr0, s_f)   # Rr is a passthrough -> no copy
    return s_seq, u_seq, new_state, new_rec_state


def _reference_step(sin_t, state, rec_state, w, b, wr, br):
    """Pure-JAX reference of one LIFRecLayer.forward (for validation)."""
    p, q, r, s = state
    pr, qr, rr, _ = rec_state
    q_new = BETA * q + TAU_S * sin_t
    p_new = ALPHA * p + TAU_M * q
    r_new = ALPHARP * r - s * WRP
    u_base = p_new @ w.T + b + r_new
    qr_new = BETA * qr + TAU_S * s
    pr_new = ALPHA * pr + TAU_M * qr
    wr_m = wr * (1.0 - jnp.eye(wr.shape[0], dtype=wr.dtype))
    u_rec = pr_new @ wr_m.T + br
    u = u_base + u_rec
    s_new = (u > 0.0).astype(u.dtype)
    return s_new, u, (p_new, q_new, r_new, s_new), (pr_new, qr_new, rr, s_new)


if __name__ == "__main__":
    key = jax.random.PRNGKey(0)
    B, N_IN, N_OUT, T = 8, 64, 128, 24    # small shapes; 3 time chunks of 8

    kw, kb, kwr, kbr, kx = jax.random.split(key, 5)
    # Deterministic synthetic parameters (base: Linear(N_IN, N_OUT),
    # rec: Linear(N_OUT, N_OUT)); scaled like nn.Linear default init.
    w = jax.random.uniform(kw, (N_OUT, N_IN), jnp.float32,
                           -1.0 / jnp.sqrt(N_IN), 1.0 / jnp.sqrt(N_IN))
    b = jax.random.uniform(kb, (N_OUT,), jnp.float32, -0.001, 0.001)
    wr = jax.random.uniform(kwr, (N_OUT, N_OUT), jnp.float32,
                            -1.0 / jnp.sqrt(N_OUT), 1.0 / jnp.sqrt(N_OUT))
    br = jax.random.uniform(kbr, (N_OUT,), jnp.float32, -0.001, 0.001)

    # Poisson-like binary spike inputs over T timesteps.
    sin_seq = (jax.random.uniform(kx, (T, B, N_IN)) < 0.3).astype(jnp.float32)

    zeros_in = jnp.zeros((B, N_IN), jnp.float32)
    zeros_out = jnp.zeros((B, N_OUT), jnp.float32)
    # init_state / init_rec_state -> all zeros on first forward call
    state0 = (zeros_in, zeros_in, zeros_out, zeros_out)
    rec_state0 = (zeros_out, zeros_out, zeros_out, zeros_out)

    # ---- single kernel call over the whole sequence ----
    s_seq, u_seq, state_k, rec_state_k = lif_rec_forward_seq(
        sin_seq, state0, rec_state0, w, b, wr, br, ts_target=8)
    jax.block_until_ready((s_seq, u_seq))

    # ---- step-by-step pure-JAX reference ----
    # S = (U > 0) is a hard threshold: elements whose reference U sits inside
    # a tiny fp-reassociation band around 0 are exempted; if such a flip ever
    # happens, the free-running reference legitimately diverges afterwards,
    # so strict checking stops there.
    THR_BAND = 2e-2
    ref_state, ref_rec_state = state0, rec_state0
    diverged = False
    for t in range(T):
        s_ref, u_ref, ref_state, ref_rec_state = _reference_step(
            sin_seq[t], ref_state, ref_rec_state, w, b, wr, br)
        if diverged:
            continue
        assert jnp.allclose(u_seq[t], u_ref, atol=2e-2, rtol=1e-3), \
            f"U mismatch at t={t}"
        flips = s_seq[t] != s_ref
        hard_flips = flips & (jnp.abs(u_ref) > THR_BAND)
        assert not bool(jnp.any(hard_flips)), \
            f"S mismatch away from threshold at t={t}"
        if bool(jnp.any(flips)):
            diverged = True

    if not diverged:
        for got, want in zip(state_k, ref_state):
            assert jnp.allclose(got, want, atol=2e-2, rtol=1e-3)
        for got, want in zip(rec_state_k, ref_rec_state):
            assert jnp.allclose(got, want, atol=2e-2, rtol=1e-3)

    print("KERNEL_OK")
</pallas_src>

<mosaic_0001>
module attributes {stable_mosaic.version = 11 : i64} {
  func.func @_lif_rec_seq_kernel(%arg0: i32, %arg1: i32, %arg2: memref<8x8x64xf32, #tpu.memory_space<vmem>>, %arg3: memref<8x64xf32, #tpu.memory_space<vmem>>, %arg4: memref<8x64xf32, #tpu.memory_space<vmem>>, %arg5: memref<8x128xf32, #tpu.memory_space<vmem>>, %arg6: memref<8x128xf32, #tpu.memory_space<vmem>>, %arg7: memref<8x128xf32, #tpu.memory_space<vmem>>, %arg8: memref<8x128xf32, #tpu.memory_space<vmem>>, %arg9: memref<64x128xf32, #tpu.memory_space<vmem>>, %arg10: memref<128x128xf32, #tpu.memory_space<vmem>>, %arg11: memref<1x128xf32, #tpu.memory_space<vmem>>, %arg12: memref<8x8x128xf32, #tpu.memory_space<vmem>>, %arg13: memref<8x8x128xf32, #tpu.memory_space<vmem>>, %arg14: memref<8x64xf32, #tpu.memory_space<vmem>>, %arg15: memref<8x64xf32, #tpu.memory_space<vmem>>, %arg16: memref<8x128xf32, #tpu.memory_space<vmem>>, %arg17: memref<8x128xf32, #tpu.memory_space<vmem>>, %arg18: memref<8x128xf32, #tpu.memory_space<vmem>>, %arg19: memref<8x64xf32, #tpu.memory_space<vmem>>, %arg20: memref<8x64xf32, #tpu.memory_space<vmem>>, %arg21: memref<8x128xf32, #tpu.memory_space<vmem>>, %arg22: memref<8x128xf32, #tpu.memory_space<vmem>>, %arg23: memref<8x128xf32, #tpu.memory_space<vmem>>, %arg24: memref<8x128xf32, #tpu.memory_space<vmem>>) attributes {dimension_semantics = [#tpu.dimension_semantics<parallel>, #tpu.dimension_semantics<arbitrary>], iteration_bounds = array<i64: 1, 3>, scalar_prefetch = 0 : i64, scratch_operands = 6 : i64, tpu.core_type = #tpu.core_type<tc>, window_params = [{transform_indices = @transform_0, window_bounds = array<i64: 8, 8, 64>}, {transform_indices = @transform_1, window_bounds = array<i64: 8, 64>}, {transform_indices = @transform_2, window_bounds = array<i64: 8, 64>}, {transform_indices = @transform_3, window_bounds = array<i64: 8, 128>}, {transform_indices = @transform_4, window_bounds = array<i64: 8, 128>}, {transform_indices = @transform_5, window_bounds = array<i64: 8, 128>}, {transform_indices = @transform_6, window_bounds = array<i64: 8, 128>}, {pipeline_mode = #tpu.pipeline_mode<synchronous>, transform_indices = @transform_7, window_bounds = array<i64: 64, 128>}, {pipeline_mode = #tpu.pipeline_mode<synchronous>, transform_indices = @transform_8, window_bounds = array<i64: 128, 128>}, {pipeline_mode = #tpu.pipeline_mode<synchronous>, transform_indices = @transform_9, window_bounds = array<i64: 1, 128>}, {transform_indices = @transform_10, window_bounds = array<i64: 8, 8, 128>}, {transform_indices = @transform_11, window_bounds = array<i64: 8, 8, 128>}, {transform_indices = @transform_12, window_bounds = array<i64: 8, 64>}, {transform_indices = @transform_13, window_bounds = array<i64: 8, 64>}, {transform_indices = @transform_14, window_bounds = array<i64: 8, 128>}, {transform_indices = @transform_15, window_bounds = array<i64: 8, 128>}, {transform_indices = @transform_16, window_bounds = array<i64: 8, 128>}]} {
    %c0_i32 = arith.constant 0 : i32
    %0 = arith.cmpi eq, %arg1, %c0_i32 : i32
    %1 = arith.extui %0 : i1 to i32
    %c0_i32_0 = arith.constant 0 : i32
    %2 = arith.cmpi ne, %1, %c0_i32_0 : i32
    scf.if %2 {
      %c0_206 = arith.constant 0 : index
      %c0_207 = arith.constant 0 : index
      %360 = vector.load %arg3[%c0_206, %c0_207] : memref<8x64xf32, #tpu.memory_space<vmem>>, vector<8x64xf32>
      %c0_208 = arith.constant 0 : index
      %c0_209 = arith.constant 0 : index
      %361 = vector.load %arg19[%c0_208, %c0_209] : memref<8x64xf32, #tpu.memory_space<vmem>>, vector<8x64xf32>
      tpu.vector_store %arg19[%c0_208, %c0_209], %360 {strides = array<i32>} : memref<8x64xf32, #tpu.memory_space<vmem>>, vector<8x64xf32>,
      %c0_210 = arith.constant 0 : index
      %c0_211 = arith.constant 0 : index
      %362 = vector.load %arg4[%c0_210, %c0_211] : memref<8x64xf32, #tpu.memory_space<vmem>>, vector<8x64xf32>
      %c0_212 = arith.constant 0 : index
      %c0_213 = arith.constant 0 : index
      %363 = vector.load %arg20[%c0_212, %c0_213] : memref<8x64xf32, #tpu.memory_space<vmem>>, vector<8x64xf32>
      tpu.vector_store %arg20[%c0_212, %c0_213], %362 {strides = array<i32>} : memref<8x64xf32, #tpu.memory_space<vmem>>, vector<8x64xf32>,
      %c0_214 = arith.constant 0 : index
      %c0_215 = arith.constant 0 : index
      %364 = vector.load %arg5[%c0_214, %c0_215] : memref<8x128xf32, #tpu.memory_space<vmem>>, vector<8x128xf32>
      %c0_216 = arith.constant 0 : index
      %c0_217 = arith.constant 0 : index
      %365 = vector.load %arg21[%c0_216, %c0_217] : memref<8x128xf32, #tpu.memory_space<vmem>>, vector<8x128xf32>
      tpu.vector_store %arg21[%c0_216, %c0_217], %364 {strides = array<i32>} : memref<8x128xf32, #tpu.memory_space<vmem>>, vector<8x128xf32>,
      %c0_218 = arith.constant 0 : index
      %c0_219 = arith.constant 0 : index
      %366 = vector.load %arg6[%c0_218, %c0_219] : memref<8x128xf32, #tpu.memory_space<vmem>>, vector<8x128xf32>
      %c0_220 = arith.constant 0 : index
      %c0_221 = arith.constant 0 : index
      %367 = vector.load %arg22[%c0_220, %c0_221] : memref<8x128xf32, #tpu.memory_space<vmem>>, vector<8x128xf32>
      tpu.vector_store %arg22[%c0_220, %c0_221], %366 {strides = array<i32>} : memref<8x128xf32, #tpu.memory_space<vmem>>, vector<8x128xf32>,
      %c0_222 = arith.constant 0 : index
      %c0_223 = arith.constant 0 : index
      %368 = vector.load %arg7[%c0_222, %c0_223] : memref<8x128xf32, #tpu.memory_space<vmem>>, vector<8x128xf32>
      %c0_224 = arith.constant 0 : index
      %c0_225 = arith.constant 0 : index
      %369 = vector.load %arg23[%c0_224, %c0_225] : memref<8x128xf32, #tpu.memory_space<vmem>>, vector<8x128xf32>
      tpu.vector_store %arg23[%c0_224, %c0_225], %368 {strides = array<i32>} : memref<8x128xf32, #tpu.memory_space<vmem>>, vector<8x128xf32>,
      %c0_226 = arith.constant 0 : index
      %c0_227 = arith.constant 0 : index
      %370 = vector.load %arg8[%c0_226, %c0_227] : memref<8x128xf32, #tpu.memory_space<vmem>>, vector<8x128xf32>
      %c0_228 = arith.constant 0 : index
      %c0_229 = arith.constant 0 : index
      %371 = vector.load %arg24[%c0_228, %c0_229] : memref<8x128xf32, #tpu.memory_space<vmem>>, vector<8x128xf32>
      tpu.vector_store %arg24[%c0_228, %c0_229], %370 {strides = array<i32>} : memref<8x128xf32, #tpu.memory_space<vmem>>, vector<8x128xf32>,
    } else {
    }
    %c0 = arith.constant 0 : index
    %c0_1 = arith.constant 0 : index
    %3 = vector.load %arg19[%c0, %c0_1] : memref<8x64xf32, #tpu.memory_space<vmem>>, vector<8x64xf32>
    %c0_2 = arith.constant 0 : index
    %c0_3 = arith.constant 0 : index
    %4 = vector.load %arg20[%c0_2, %c0_3] : memref<8x64xf32, #tpu.memory_space<vmem>>, vector<8x64xf32>
    %c0_4 = arith.constant 0 : index
    %c0_5 = arith.constant 0 : index
    %c0_6 = arith.constant 0 : index
    %5 = vector.load %arg2[%c0_4, %c0_5, %c0_6] : memref<8x8x64xf32, #tpu.memory_space<vmem>>, vector<1x8x64xf32>
    %6 = vector.shape_cast %5 : vector<1x8x64xf32> to vector<8x64xf32>
    %cst = arith.constant 8.500000e-01 : f32
    %7 = vector.broadcast %cst : f32 to vector<8x64xf32>
    %8 = arith.mulf %7, %4 : vector<8x64xf32>
    %cst_7 = arith.constant 6.66666651 : f32
    %9 = vector.broadcast %cst_7 : f32 to vector<8x64xf32>
    %10 = arith.mulf %9, %6 : vector<8x64xf32>
    %11 = arith.addf %8, %10 : vector<8x64xf32>
    %cst_8 = arith.constant 0.899999976 : f32
    %12 = vector.broadcast %cst_8 : f32 to vector<8x64xf32>
    %13 = arith.mulf %12, %3 : vector<8x64xf32>
    %cst_9 = arith.constant 1.000000e+01 : f32
    %14 = vector.broadcast %cst_9 : f32 to vector<8x64xf32>
    %15 = arith.mulf %14, %4 : vector<8x64xf32>
    %16 = arith.addf %13, %15 : vector<8x64xf32>
    %c1 = arith.constant 1 : index
    %c0_10 = arith.constant 0 : index
    %c0_11 = arith.constant 0 : index
    %17 = vector.load %arg2[%c1, %c0_10, %c0_11] : memref<8x8x64xf32, #tpu.memory_space<vmem>>, vector<1x8x64xf32>
    %18 = vector.shape_cast %17 : vector<1x8x64xf32> to vector<8x64xf32>
    %cst_12 = arith.constant 8.500000e-01 : f32
    %19 = vector.broadcast %cst_12 : f32 to vector<8x64xf32>
    %20 = arith.mulf %19, %11 : vector<8x64xf32>
    %cst_13 = arith.constant 6.66666651 : f32
    %21 = vector.broadcast %cst_13 : f32 to vector<8x64xf32>
    %22 = arith.mulf %21, %18 : vector<8x64xf32>
    %23 = arith.addf %20, %22 : vector<8x64xf32>
    %cst_14 = arith.constant 0.899999976 : f32
    %24 = vector.broadcast %cst_14 : f32 to vector<8x64xf32>
    %25 = arith.mulf %24, %16 : vector<8x64xf32>
    %cst_15 = arith.constant 1.000000e+01 : f32
    %26 = vector.broadcast %cst_15 : f32 to vector<8x64xf32>
    %27 = arith.mulf %26, %11 : vector<8x64xf32>
    %28 = arith.addf %25, %27 : vector<8x64xf32>
    %c2 = arith.constant 2 : index
    %c0_16 = arith.constant 0 : index
    %c0_17 = arith.constant 0 : index
    %29 = vector.load %arg2[%c2, %c0_16, %c0_17] : memref<8x8x64xf32, #tpu.memory_space<vmem>>, vector<1x8x64xf32>
    %30 = vector.shape_cast %29 : vector<1x8x64xf32> to vector<8x64xf32>
    %cst_18 = arith.constant 8.500000e-01 : f32
    %31 = vector.broadcast %cst_18 : f32 to vector<8x64xf32>
    %32 = arith.mulf %31, %23 : vector<8x64xf32>
    %cst_19 = arith.constant 6.66666651 : f32
    %33 = vector.broadcast %cst_19 : f32 to vector<8x64xf32>
    %34 = arith.mulf %33, %30 : vector<8x64xf32>
    %35 = arith.addf %32, %34 : vector<8x64xf32>
    %cst_20 = arith.constant 0.899999976 : f32
    %36 = vector.broadcast %cst_20 : f32 to vector<8x64xf32>
    %37 = arith.mulf %36, %28 : vector<8x64xf32>
    %cst_21 = arith.constant 1.000000e+01 : f32
    %38 = vector.broadcast %cst_21 : f32 to vector<8x64xf32>
    %39 = arith.mulf %38, %23 : vector<8x64xf32>
    %40 = arith.addf %37, %39 : vector<8x64xf32>
    %c3 = arith.constant 3 : index
    %c0_22 = arith.constant 0 : index
    %c0_23 = arith.constant 0 : index
    %41 = vector.load %arg2[%c3, %c0_22, %c0_23] : memref<8x8x64xf32, #tpu.memory_space<vmem>>, vector<1x8x64xf32>
    %42 = vector.shape_cast %41 : vector<1x8x64xf32> to vector<8x64xf32>
    %cst_24 = arith.constant 8.500000e-01 : f32
    %43 = vector.broadcast %cst_24 : f32 to vector<8x64xf32>
    %44 = arith.mulf %43, %35 : vector<8x64xf32>
    %cst_25 = arith.constant 6.66666651 : f32
    %45 = vector.broadcast %cst_25 : f32 to vector<8x64xf32>
    %46 = arith.mulf %45, %42 : vector<8x64xf32>
    %47 = arith.addf %44, %46 : vector<8x64xf32>
    %cst_26 = arith.constant 0.899999976 : f32
    %48 = vector.broadcast %cst_26 : f32 to vector<8x64xf32>
    %49 = arith.mulf %48, %40 : vector<8x64xf32>
    %cst_27 = arith.constant 1.000000e+01 : f32
    %50 = vector.broadcast %cst_27 : f32 to vector<8x64xf32>
    %51 = arith.mulf %50, %35 : vector<8x64xf32>
    %52 = arith.addf %49, %51 : vector<8x64xf32>
    %c4 = arith.constant 4 : index
    %c0_28 = arith.constant 0 : index
    %c0_29 = arith.constant 0 : index
    %53 = vector.load %arg2[%c4, %c0_28, %c0_29] : memref<8x8x64xf32, #tpu.memory_space<vmem>>, vector<1x8x64xf32>
    %54 = vector.shape_cast %53 : vector<1x8x64xf32> to vector<8x64xf32>
    %cst_30 = arith.constant 8.500000e-01 : f32
    %55 = vector.broadcast %cst_30 : f32 to vector<8x64xf32>
    %56 = arith.mulf %55, %47 : vector<8x64xf32>
    %cst_31 = arith.constant 6.66666651 : f32
    %57 = vector.broadcast %cst_31 : f32 to vector<8x64xf32>
    %58 = arith.mulf %57, %54 : vector<8x64xf32>
    %59 = arith.addf %56, %58 : vector<8x64xf32>
    %cst_32 = arith.constant 0.899999976 : f32
    %60 = vector.broadcast %cst_32 : f32 to vector<8x64xf32>
    %61 = arith.mulf %60, %52 : vector<8x64xf32>
    %cst_33 = arith.constant 1.000000e+01 : f32
    %62 = vector.broadcast %cst_33 : f32 to vector<8x64xf32>
    %63 = arith.mulf %62, %47 : vector<8x64xf32>
    %64 = arith.addf %61, %63 : vector<8x64xf32>
    %c5 = arith.constant 5 : index
    %c0_34 = arith.constant 0 : index
    %c0_35 = arith.constant 0 : index
    %65 = vector.load %arg2[%c5, %c0_34, %c0_35] : memref<8x8x64xf32, #tpu.memory_space<vmem>>, vector<1x8x64xf32>
    %66 = vector.shape_cast %65 : vector<1x8x64xf32> to vector<8x64xf32>
    %cst_36 = arith.constant 8.500000e-01 : f32
    %67 = vector.broadcast %cst_36 : f32 to vector<8x64xf32>
    %68 = arith.mulf %67, %59 : vector<8x64xf32>
    %cst_37 = arith.constant 6.66666651 : f32
    %69 = vector.broadcast %cst_37 : f32 to vector<8x64xf32>
    %70 = arith.mulf %69, %66 : vector<8x64xf32>
    %71 = arith.addf %68, %70 : vector<8x64xf32>
    %cst_38 = arith.constant 0.899999976 : f32
    %72 = vector.broadcast %cst_38 : f32 to vector<8x64xf32>
    %73 = arith.mulf %72, %64 : vector<8x64xf32>
    %cst_39 = arith.constant 1.000000e+01 : f32
    %74 = vector.broadcast %cst_39 : f32 to vector<8x64xf32>
    %75 = arith.mulf %74, %59 : vector<8x64xf32>
    %76 = arith.addf %73, %75 : vector<8x64xf32>
    %c6 = arith.constant 6 : index
    %c0_40 = arith.constant 0 : index
    %c0_41 = arith.constant 0 : index
    %77 = vector.load %arg2[%c6, %c0_40, %c0_41] : memref<8x8x64xf32, #tpu.memory_space<vmem>>, vector<1x8x64xf32>
    %78 = vector.shape_cast %77 : vector<1x8x64xf32> to vector<8x64xf32>
    %cst_42 = arith.constant 8.500000e-01 : f32
    %79 = vector.broadcast %cst_42 : f32 to vector<8x64xf32>
    %80 = arith.mulf %79, %71 : vector<8x64xf32>
    %cst_43 = arith.constant 6.66666651 : f32
    %81 = vector.broadcast %cst_43 : f32 to vector<8x64xf32>
    %82 = arith.mulf %81, %78 : vector<8x64xf32>
    %83 = arith.addf %80, %82 : vector<8x64xf32>
    %cst_44 = arith.constant 0.899999976 : f32
    %84 = vector.broadcast %cst_44 : f32 to vector<8x64xf32>
    %85 = arith.mulf %84, %76 : vector<8x64xf32>
    %cst_45 = arith.constant 1.000000e+01 : f32
    %86 = vector.broadcast %cst_45 : f32 to vector<8x64xf32>
    %87 = arith.mulf %86, %71 : vector<8x64xf32>
    %88 = arith.addf %85, %87 : vector<8x64xf32>
    %c7 = arith.constant 7 : index
    %c0_46 = arith.constant 0 : index
    %c0_47 = arith.constant 0 : index
    %89 = vector.load %arg2[%c7, %c0_46, %c0_47] : memref<8x8x64xf32, #tpu.memory_space<vmem>>, vector<1x8x64xf32>
    %90 = vector.shape_cast %89 : vector<1x8x64xf32> to vector<8x64xf32>
    %cst_48 = arith.constant 8.500000e-01 : f32
    %91 = vector.broadcast %cst_48 : f32 to vector<8x64xf32>
    %92 = arith.mulf %91, %83 : vector<8x64xf32>
    %cst_49 = arith.constant 6.66666651 : f32
    %93 = vector.broadcast %cst_49 : f32 to vector<8x64xf32>
    %94 = arith.mulf %93, %90 : vector<8x64xf32>
    %95 = arith.addf %92, %94 : vector<8x64xf32>
    %cst_50 = arith.constant 0.899999976 : f32
    %96 = vector.broadcast %cst_50 : f32 to vector<8x64xf32>
    %97 = arith.mulf %96, %88 : vector<8x64xf32>
    %cst_51 = arith.constant 1.000000e+01 : f32
    %98 = vector.broadcast %cst_51 : f32 to vector<8x64xf32>
    %99 = arith.mulf %98, %83 : vector<8x64xf32>
    %100 = arith.addf %97, %99 : vector<8x64xf32>
    %c0_52 = arith.constant 0 : index
    %c0_53 = arith.constant 0 : index
    %101 = vector.load %arg19[%c0_52, %c0_53] : memref<8x64xf32, #tpu.memory_space<vmem>>, vector<8x64xf32>
    tpu.vector_store %arg19[%c0_52, %c0_53], %100 {strides = array<i32>} : memref<8x64xf32, #tpu.memory_space<vmem>>, vector<8x64xf32>,
    %c0_54 = arith.constant 0 : index
    %c0_55 = arith.constant 0 : index
    %102 = vector.load %arg20[%c0_54, %c0_55] : memref<8x64xf32, #tpu.memory_space<vmem>>, vector<8x64xf32>
    tpu.vector_store %arg20[%c0_54, %c0_55], %95 {strides = array<i32>} : memref<8x64xf32, #tpu.memory_space<vmem>>, vector<8x64xf32>,
    %103 = tpu.concatenate %16, %28, %40, %52, %64, %76, %88, %100 in 0 : vector<8x64xf32>, vector<8x64xf32>, vector<8x64xf32>, vector<8x64xf32>, vector<8x64xf32>, vector<8x64xf32>, vector<8x64xf32>, vector<8x64xf32> -> vector<64x64xf32>
    %c0_56 = arith.constant 0 : index
    %c0_57 = arith.constant 0 : index
    %104 = vector.load %arg9[%c0_56, %c0_57] : memref<64x128xf32, #tpu.memory_space<vmem>>, vector<64x128xf32>
    %cst_58 = arith.constant dense<0.000000e+00> : vector<64x128xf32>
    %105 = tpu.matmul %103, %104, %cst_58 {dimension_numbers = #tpu.dot_dimension_numbers<[1], [0], [0], [1], [0, 0, 1, 1], [], []>} : vector<64x64xf32>, vector<64x128xf32>, vector<64x128xf32> -> vector<64x128xf32>
    %c0_59 = arith.constant 0 : index
    %c0_60 = arith.constant 0 : index
    %106 = vector.load %arg11[%c0_59, %c0_60] : memref<1x128xf32, #tpu.memory_space<vmem>>, vector<1x128xf32>
    %107 = vector.broadcast %106 : vector<1x128xf32> to vector<64x128xf32>
    %108 = arith.addf %105, %107 : vector<64x128xf32>
    %c0_61 = arith.constant 0 : index
    %c0_62 = arith.constant 0 : index
    %109 = vector.load %arg21[%c0_61, %c0_62] : memref<8x128xf32, #tpu.memory_space<vmem>>, vector<8x128xf32>
    %c0_63 = arith.constant 0 : index
    %c0_64 = arith.constant 0 : index
    %110 = vector.load %arg22[%c0_63, %c0_64] : memref<8x128xf32, #tpu.memory_space<vmem>>, vector<8x128xf32>
    %c0_65 = arith.constant 0 : index
    %c0_66 = arith.constant 0 : index
    %111 = vector.load %arg23[%c0_65, %c0_66] : memref<8x128xf32, #tpu.memory_space<vmem>>, vector<8x128xf32>
    %c0_67 = arith.constant 0 : index
    %c0_68 = arith.constant 0 : index
    %112 = vector.load %arg24[%c0_67, %c0_68] : memref<8x128xf32, #tpu.memory_space<vmem>>, vector<8x128xf32>
    %cst_69 = arith.constant 6.500000e-01 : f32
    %113 = vector.broadcast %cst_69 : f32 to vector<8x128xf32>
    %114 = arith.mulf %113, %109 : vector<8x128xf32>
    %cst_70 = arith.constant 1.000000e+00 : f32
    %115 = vector.broadcast %cst_70 : f32 to vector<8x128xf32>
    %116 = arith.mulf %115, %110 : vector<8x128xf32>
    %117 = arith.subf %114, %116 : vector<8x128xf32>
    %cst_71 = arith.constant 8.500000e-01 : f32
    %118 = vector.broadcast %cst_71 : f32 to vector<8x128xf32>
    %119 = arith.mulf %118, %112 : vector<8x128xf32>
    %cst_72 = arith.constant 6.66666651 : f32
    %120 = vector.broadcast %cst_72 : f32 to vector<8x128xf32>
    %121 = arith.mulf %120, %110 : vector<8x128xf32>
    %122 = arith.addf %119, %121 : vector<8x128xf32>
    %cst_73 = arith.constant 0.899999976 : f32
    %123 = vector.broadcast %cst_73 : f32 to vector<8x128xf32>
    %124 = arith.mulf %123, %111 : vector<8x128xf32>
    %cst_74 = arith.constant 1.000000e+01 : f32
    %125 = vector.broadcast %cst_74 : f32 to vector<8x128xf32>
    %126 = arith.mulf %125, %112 : vector<8x128xf32>
    %127 = arith.addf %124, %126 : vector<8x128xf32>
    %128 = vector.extract_strided_slice %108 {offsets = [0, 0], sizes = [8, 128], strides = [1, 1]} : vector<64x128xf32> to vector<8x128xf32>
    %129 = arith.addf %128, %117 : vector<8x128xf32>
    %c0_75 = arith.constant 0 : index
    %c0_76 = arith.constant 0 : index
    %130 = vector.load %arg10[%c0_75, %c0_76] : memref<128x128xf32, #tpu.memory_space<vmem>>, vector<128x128xf32>
    %cst_77 = arith.constant dense<0.000000e+00> : vector<8x128xf32>
    %131 = tpu.matmul %127, %130, %cst_77 {dimension_numbers = #tpu.dot_dimension_numbers<[1], [0], [0], [1], [0, 0, 1, 1], [], []>} : vector<8x128xf32>, vector<128x128xf32>, vector<8x128xf32> -> vector<8x128xf32>
    %132 = arith.addf %129, %131 : vector<8x128xf32>
    %cst_78 = arith.constant 0.000000e+00 : f32
    %133 = vector.broadcast %cst_78 : f32 to vector<8x128xf32>
    %134 = arith.cmpf ogt, %132, %133 : vector<8x128xf32>
    %135 = arith.extui %134 : vector<8x128xi1> to vector<8x128xi32>
    %136 = arith.sitofp %135 : vector<8x128xi32> to vector<8x128xf32>
    %c0_79 = arith.constant 0 : index
    %c0_80 = arith.constant 0 : index
    %c0_81 = arith.constant 0 : index
    %137 = vector.load %arg12[%c0_79, %c0_80, %c0_81] : memref<8x8x128xf32, #tpu.memory_space<vmem>>, vector<1x8x128xf32>
    %138 = vector.shape_cast %137 : vector<1x8x128xf32> to vector<8x128xf32>
    %139 = vector.shape_cast %136 : vector<8x128xf32> to vector<1x8x128xf32>
    tpu.vector_store %arg12[%c0_79, %c0_80, %c0_81], %139 {strides = array<i32>} : memref<8x8x128xf32, #tpu.memory_space<vmem>>, vector<1x8x128xf32>,
    %c0_82 = arith.constant 0 : index
    %c0_83 = arith.constant 0 : index
    %c0_84 = arith.constant 0 : index
    %140 = vector.load %arg13[%c0_82, %c0_83, %c0_84] : memref<8x8x128xf32, #tpu.memory_space<vmem>>, vector<1x8x128xf32>
    %141 = vector.shape_cast %140 : vector<1x8x128xf32> to vector<8x128xf32>
    %142 = vector.shape_cast %132 : vector<8x128xf32> to vector<1x8x128xf32>
    tpu.vector_store %arg13[%c0_82, %c0_83, %c0_84], %142 {strides = array<i32>} : memref<8x8x128xf32, #tpu.memory_space<vmem>>, vector<1x8x128xf32>,
    %cst_85 = arith.constant 6.500000e-01 : f32
    %143 = vector.broadcast %cst_85 : f32 to vector<8x128xf32>
    %144 = arith.mulf %143, %117 : vector<8x128xf32>
    %cst_86 = arith.constant 1.000000e+00 : f32
    %145 = vector.broadcast %cst_86 : f32 to vector<8x128xf32>
    %146 = arith.mulf %145, %136 : vector<8x128xf32>
    %147 = arith.subf %144, %146 : vector<8x128xf32>
    %cst_87 = arith.constant 8.500000e-01 : f32
    %148 = vector.broadcast %cst_87 : f32 to vector<8x128xf32>
    %149 = arith.mulf %148, %122 : vector<8x128xf32>
    %cst_88 = arith.constant 6.66666651 : f32
    %150 = vector.broadcast %cst_88 : f32 to vector<8x128xf32>
    %151 = arith.mulf %150, %136 : vector<8x128xf32>
    %152 = arith.addf %149, %151 : vector<8x128xf32>
    %cst_89 = arith.constant 0.899999976 : f32
    %153 = vector.broadcast %cst_89 : f32 to vector<8x128xf32>
    %154 = arith.mulf %153, %127 : vector<8x128xf32>
    %cst_90 = arith.constant 1.000000e+01 : f32
    %155 = vector.broadcast %cst_90 : f32 to vector<8x128xf32>
    %156 = arith.mulf %155, %122 : vector<8x128xf32>
    %157 = arith.addf %154, %156 : vector<8x128xf32>
    %158 = vector.extract_strided_slice %108 {offsets = [8, 0], sizes = [8, 128], strides = [1, 1]} : vector<64x128xf32> to vector<8x128xf32>
    %159 = arith.addf %158, %147 : vector<8x128xf32>
    %c0_91 = arith.constant 0 : index
    %c0_92 = arith.constant 0 : index
    %160 = vector.load %arg10[%c0_91, %c0_92] : memref<128x128xf32, #tpu.memory_space<vmem>>, vector<128x128xf32>
    %cst_93 = arith.constant dense<0.000000e+00> : vector<8x128xf32>
    %161 = tpu.matmul %157, %160, %cst_93 {dimension_numbers = #tpu.dot_dimension_numbers<[1], [0], [0], [1], [0, 0, 1, 1], [], []>} : vector<8x128xf32>, vector<128x128xf32>, vector<8x128xf32> -> vector<8x128xf32>
    %162 = arith.addf %159, %161 : vector<8x128xf32>
    %cst_94 = arith.constant 0.000000e+00 : f32
    %163 = vector.broadcast %cst_94 : f32 to vector<8x128xf32>
    %164 = arith.cmpf ogt, %162, %163 : vector<8x128xf32>
    %165 = arith.extui %164 : vector<8x128xi1> to vector<8x128xi32>
    %166 = arith.sitofp %165 : vector<8x128xi32> to vector<8x128xf32>
    %c1_95 = arith.constant 1 : index
    %c0_96 = arith.constant 0 : index
    %c0_97 = arith.constant 0 : index
    %167 = vector.load %arg12[%c1_95, %c0_96, %c0_97] : memref<8x8x128xf32, #tpu.memory_space<vmem>>, vector<1x8x128xf32>
    %168 = vector.shape_cast %167 : vector<1x8x128xf32> to vector<8x128xf32>
    %169 = vector.shape_cast %166 : vector<8x128xf32> to vector<1x8x128xf32>
    tpu.vector_store %arg12[%c1_95, %c0_96, %c0_97], %169 {strides = array<i32>} : memref<8x8x128xf32, #tpu.memory_space<vmem>>, vector<1x8x128xf32>,
    %c1_98 = arith.constant 1 : index
    %c0_99 = arith.constant 0 : index
    %c0_100 = arith.constant 0 : index
    %170 = vector.load %arg13[%c1_98, %c0_99, %c0_100] : memref<8x8x128xf32, #tpu.memory_space<vmem>>, vector<1x8x128xf32>
    %171 = vector.shape_cast %170 : vector<1x8x128xf32> to vector<8x128xf32>
    %172 = vector.shape_cast %162 : vector<8x128xf32> to vector<1x8x128xf32>
    tpu.vector_store %arg13[%c1_98, %c0_99, %c0_100], %172 {strides = array<i32>} : memref<8x8x128xf32, #tpu.memory_space<vmem>>, vector<1x8x128xf32>,
    %cst_101 = arith.constant 6.500000e-01 : f32
    %173 = vector.broadcast %cst_101 : f32 to vector<8x128xf32>
    %174 = arith.mulf %173, %147 : vector<8x128xf32>
    %cst_102 = arith.constant 1.000000e+00 : f32
    %175 = vector.broadcast %cst_102 : f32 to vector<8x128xf32>
    %176 = arith.mulf %175, %166 : vector<8x128xf32>
    %177 = arith.subf %174, %176 : vector<8x128xf32>
    %cst_103 = arith.constant 8.500000e-01 : f32
    %178 = vector.broadcast %cst_103 : f32 to vector<8x128xf32>
    %179 = arith.mulf %178, %152 : vector<8x128xf32>
    %cst_104 = arith.constant 6.66666651 : f32
    %180 = vector.broadcast %cst_104 : f32 to vector<8x128xf32>
    %181 = arith.mulf %180, %166 : vector<8x128xf32>
    %182 = arith.addf %179, %181 : vector<8x128xf32>
    %cst_105 = arith.constant 0.899999976 : f32
    %183 = vector.broadcast %cst_105 : f32 to vector<8x128xf32>
    %184 = arith.mulf %183, %157 : vector<8x128xf32>
    %cst_106 = arith.constant 1.000000e+01 : f32
    %185 = vector.broadcast %cst_106 : f32 to vector<8x128xf32>
    %186 = arith.mulf %185, %152 : vector<8x128xf32>
    %187 = arith.addf %184, %186 : vector<8x128xf32>
    %188 = vector.extract_strided_slice %108 {offsets = [16, 0], sizes = [8, 128], strides = [1, 1]} : vector<64x128xf32> to vector<8x128xf32>
    %189 = arith.addf %188, %177 : vector<8x128xf32>
    %c0_107 = arith.constant 0 : index
    %c0_108 = arith.constant 0 : index
    %190 = vector.load %arg10[%c0_107, %c0_108] : memref<128x128xf32, #tpu.memory_space<vmem>>, vector<128x128xf32>
    %cst_109 = arith.constant dense<0.000000e+00> : vector<8x128xf32>
    %191 = tpu.matmul %187, %190, %cst_109 {dimension_numbers = #tpu.dot_dimension_numbers<[1], [0], [0], [1], [0, 0, 1, 1], [], []>} : vector<8x128xf32>, vector<128x128xf32>, vector<8x128xf32> -> vector<8x128xf32>
    %192 = arith.addf %189, %191 : vector<8x128xf32>
    %cst_110 = arith.constant 0.000000e+00 : f32
    %193 = vector.broadcast %cst_110 : f32 to vector<8x128xf32>
    %194 = arith.cmpf ogt, %192, %193 : vector<8x128xf32>
    %195 = arith.extui %194 : vector<8x128xi1> to vector<8x128xi32>
    %196 = arith.sitofp %195 : vector<8x128xi32> to vector<8x128xf32>
    %c2_111 = arith.constant 2 : index
    %c0_112 = arith.constant 0 : index
    %c0_113 = arith.constant 0 : index
    %197 = vector.load %arg12[%c2_111, %c0_112, %c0_113] : memref<8x8x128xf32, #tpu.memory_space<vmem>>, vector<1x8x128xf32>
    %198 = vector.shape_cast %197 : vector<1x8x128xf32> to vector<8x128xf32>
    %199 = vector.shape_cast %196 : vector<8x128xf32> to vector<1x8x128xf32>
    tpu.vector_store %arg12[%c2_111, %c0_112, %c0_113], %199 {strides = array<i32>} : memref<8x8x128xf32, #tpu.memory_space<vmem>>, vector<1x8x128xf32>,
    %c2_114 = arith.constant 2 : index
    %c0_115 = arith.constant 0 : index
    %c0_116 = arith.constant 0 : index
    %200 = vector.load %arg13[%c2_114, %c0_115, %c0_116] : memref<8x8x128xf32, #tpu.memory_space<vmem>>, vector<1x8x128xf32>
    %201 = vector.shape_cast %200 : vector<1x8x128xf32> to vector<8x128xf32>
    %202 = vector.shape_cast %192 : vector<8x128xf32> to vector<1x8x128xf32>
    tpu.vector_store %arg13[%c2_114, %c0_115, %c0_116], %202 {strides = array<i32>} : memref<8x8x128xf32, #tpu.memory_space<vmem>>, vector<1x8x128xf32>,
    %cst_117 = arith.constant 6.500000e-01 : f32
    %203 = vector.broadcast %cst_117 : f32 to vector<8x128xf32>
    %204 = arith.mulf %203, %177 : vector<8x128xf32>
    %cst_118 = arith.constant 1.000000e+00 : f32
    %205 = vector.broadcast %cst_118 : f32 to vector<8x128xf32>
    %206 = arith.mulf %205, %196 : vector<8x128xf32>
    %207 = arith.subf %204, %206 : vector<8x128xf32>
    %cst_119 = arith.constant 8.500000e-01 : f32
    %208 = vector.broadcast %cst_119 : f32 to vector<8x128xf32>
    %209 = arith.mulf %208, %182 : vector<8x128xf32>
    %cst_120 = arith.constant 6.66666651 : f32
    %210 = vector.broadcast %cst_120 : f32 to vector<8x128xf32>
    %211 = arith.mulf %210, %196 : vector<8x128xf32>
    %212 = arith.addf %209, %211 : vector<8x128xf32>
    %cst_121 = arith.constant 0.899999976 : f32
    %213 = vector.broadcast %cst_121 : f32 to vector<8x128xf32>
    %214 = arith.mulf %213, %187 : vector<8x128xf32>
    %cst_122 = arith.constant 1.000000e+01 : f32
    %215 = vector.broadcast %cst_122 : f32 to vector<8x128xf32>
    %216 = arith.mulf %215, %182 : vector<8x128xf32>
    %217 = arith.addf %214, %216 : vector<8x128xf32>
    %218 = vector.extract_strided_slice %108 {offsets = [24, 0], sizes = [8, 128], strides = [1, 1]} : vector<64x128xf32> to vector<8x128xf32>
    %219 = arith.addf %218, %207 : vector<8x128xf32>
    %c0_123 = arith.constant 0 : index
    %c0_124 = arith.constant 0 : index
    %220 = vector.load %arg10[%c0_123, %c0_124] : memref<128x128xf32, #tpu.memory_space<vmem>>, vector<128x128xf32>
    %cst_125 = arith.constant dense<0.000000e+00> : vector<8x128xf32>
    %221 = tpu.matmul %217, %220, %cst_125 {dimension_numbers = #tpu.dot_dimension_numbers<[1], [0], [0], [1], [0, 0, 1, 1], [], []>} : vector<8x128xf32>, vector<128x128xf32>, vector<8x128xf32> -> vector<8x128xf32>
    %222 = arith.addf %219, %221 : vector<8x128xf32>
    %cst_126 = arith.constant 0.000000e+00 : f32
    %223 = vector.broadcast %cst_126 : f32 to vector<8x128xf32>
    %224 = arith.cmpf ogt, %222, %223 : vector<8x128xf32>
    %225 = arith.extui %224 : vector<8x128xi1> to vector<8x128xi32>
    %226 = arith.sitofp %225 : vector<8x128xi32> to vector<8x128xf32>
    %c3_127 = arith.constant 3 : index
    %c0_128 = arith.constant 0 : index
    %c0_129 = arith.constant 0 : index
    %227 = vector.load %arg12[%c3_127, %c0_128, %c0_129] : memref<8x8x128xf32, #tpu.memory_space<vmem>>, vector<1x8x128xf32>
    %228 = vector.shape_cast %227 : vector<1x8x128xf32> to vector<8x128xf32>
    %229 = vector.shape_cast %226 : vector<8x128xf32> to vector<1x8x128xf32>
    tpu.vector_store %arg12[%c3_127, %c0_128, %c0_129], %229 {strides = array<i32>} : memref<8x8x128xf32, #tpu.memory_space<vmem>>, vector<1x8x128xf32>,
    %c3_130 = arith.constant 3 : index
    %c0_131 = arith.constant 0 : index
    %c0_132 = arith.constant 0 : index
    %230 = vector.load %arg13[%c3_130, %c0_131, %c0_132] : memref<8x8x128xf32, #tpu.memory_space<vmem>>, vector<1x8x128xf32>
    %231 = vector.shape_cast %230 : vector<1x8x128xf32> to vector<8x128xf32>
    %232 = vector.shape_cast %222 : vector<8x128xf32> to vector<1x8x128xf32>
    tpu.vector_store %arg13[%c3_130, %c0_131, %c0_132], %232 {strides = array<i32>} : memref<8x8x128xf32, #tpu.memory_space<vmem>>, vector<1x8x128xf32>,
    %cst_133 = arith.constant 6.500000e-01 : f32
    %233 = vector.broadcast %cst_133 : f32 to vector<8x128xf32>
    %234 = arith.mulf %233, %207 : vector<8x128xf32>
    %cst_134 = arith.constant 1.000000e+00 : f32
    %235 = vector.broadcast %cst_134 : f32 to vector<8x128xf32>
    %236 = arith.mulf %235, %226 : vector<8x128xf32>
    %237 = arith.subf %234, %236 : vector<8x128xf32>
    %cst_135 = arith.constant 8.500000e-01 : f32
    %238 = vector.broadcast %cst_135 : f32 to vector<8x128xf32>
    %239 = arith.mulf %238, %212 : vector<8x128xf32>
    %cst_136 = arith.constant 6.66666651 : f32
    %240 = vector.broadcast %cst_136 : f32 to vector<8x128xf32>
    %241 = arith.mulf %240, %226 : vector<8x128xf32>
    %242 = arith.addf %239, %241 : vector<8x128xf32>
    %cst_137 = arith.constant 0.899999976 : f32
    %243 = vector.broadcast %cst_137 : f32 to vector<8x128xf32>
    %244 = arith.mulf %243, %217 : vector<8x128xf32>
    %cst_138 = arith.constant 1.000000e+01 : f32
    %245 = vector.broadcast %cst_138 : f32 to vector<8x128xf32>
    %246 = arith.mulf %245, %212 : vector<8x128xf32>
    %247 = arith.addf %244, %246 : vector<8x128xf32>
    %248 = vector.extract_strided_slice %108 {offsets = [32, 0], sizes = [8, 128], strides = [1, 1]} : vector<64x128xf32> to vector<8x128xf32>
    %249 = arith.addf %248, %237 : vector<8x128xf32>
    %c0_139 = arith.constant 0 : index
    %c0_140 = arith.constant 0 : index
    %250 = vector.load %arg10[%c0_139, %c0_140] : memref<128x128xf32, #tpu.memory_space<vmem>>, vector<128x128xf32>
    %cst_141 = arith.constant dense<0.000000e+00> : vector<8x128xf32>
    %251 = tpu.matmul %247, %250, %cst_141 {dimension_numbers = #tpu.dot_dimension_numbers<[1], [0], [0], [1], [0, 0, 1, 1], [], []>} : vector<8x128xf32>, vector<128x128xf32>, vector<8x128xf32> -> vector<8x128xf32>
    %252 = arith.addf %249, %251 : vector<8x128xf32>
    %cst_142 = arith.constant 0.000000e+00 : f32
    %253 = vector.broadcast %cst_142 : f32 to vector<8x128xf32>
    %254 = arith.cmpf ogt, %252, %253 : vector<8x128xf32>
    %255 = arith.extui %254 : vector<8x128xi1> to vector<8x128xi32>
    %256 = arith.sitofp %255 : vector<8x128xi32> to vector<8x128xf32>
    %c4_143 = arith.constant 4 : index
    %c0_144 = arith.constant 0 : index
    %c0_145 = arith.constant 0 : index
    %257 = vector.load %arg12[%c4_143, %c0_144, %c0_145] : memref<8x8x128xf32, #tpu.memory_space<vmem>>, vector<1x8x128xf32>
    %258 = vector.shape_cast %257 : vector<1x8x128xf32> to vector<8x128xf32>
    %259 = vector.shape_cast %256 : vector<8x128xf32> to vector<1x8x128xf32>
    tpu.vector_store %arg12[%c4_143, %c0_144, %c0_145], %259 {strides = array<i32>} : memref<8x8x128xf32, #tpu.memory_space<vmem>>, vector<1x8x128xf32>,
    %c4_146 = arith.constant 4 : index
    %c0_147 = arith.constant 0 : index
    %c0_148 = arith.constant 0 : index
    %260 = vector.load %arg13[%c4_146, %c0_147, %c0_148] : memref<8x8x128xf32, #tpu.memory_space<vmem>>, vector<1x8x128xf32>
    %261 = vector.shape_cast %260 : vector<1x8x128xf32> to vector<8x128xf32>
    %262 = vector.shape_cast %252 : vector<8x128xf32> to vector<1x8x128xf32>
    tpu.vector_store %arg13[%c4_146, %c0_147, %c0_148], %262 {strides = array<i32>} : memref<8x8x128xf32, #tpu.memory_space<vmem>>, vector<1x8x128xf32>,
    %cst_149 = arith.constant 6.500000e-01 : f32
    %263 = vector.broadcast %cst_149 : f32 to vector<8x128xf32>
    %264 = arith.mulf %263, %237 : vector<8x128xf32>
    %cst_150 = arith.constant 1.000000e+00 : f32
    %265 = vector.broadcast %cst_150 : f32 to vector<8x128xf32>
    %266 = arith.mulf %265, %256 : vector<8x128xf32>
    %267 = arith.subf %264, %266 : vector<8x128xf32>
    %cst_151 = arith.constant 8.500000e-01 : f32
    %268 = vector.broadcast %cst_151 : f32 to vector<8x128xf32>
    %269 = arith.mulf %268, %242 : vector<8x128xf32>
    %cst_152 = arith.constant 6.66666651 : f32
    %270 = vector.broadcast %cst_152 : f32 to vector<8x128xf32>
    %271 = arith.mulf %270, %256 : vector<8x128xf32>
    %272 = arith.addf %269, %271 : vector<8x128xf32>
    %cst_153 = arith.constant 0.899999976 : f32
    %273 = vector.broadcast %cst_153 : f32 to vector<8x128xf32>
    %274 = arith.mulf %273, %247 : vector<8x128xf32>
    %cst_154 = arith.constant 1.000000e+01 : f32
    %275 = vector.broadcast %cst_154 : f32 to vector<8x128xf32>
    %276 = arith.mulf %275, %242 : vector<8x128xf32>
    %277 = arith.addf %274, %276 : vector<8x128xf32>
    %278 = vector.extract_strided_slice %108 {offsets = [40, 0], sizes = [8, 128], strides = [1, 1]} : vector<64x128xf32> to vector<8x128xf32>
    %279 = arith.addf %278, %267 : vector<8x128xf32>
    %c0_155 = arith.constant 0 : index
    %c0_156 = arith.constant 0 : index
    %280 = vector.load %arg10[%c0_155, %c0_156] : memref<128x128xf32, #tpu.memory_space<vmem>>, vector<128x128xf32>
    %cst_157 = arith.constant dense<0.000000e+00> : vector<8x128xf32>
    %281 = tpu.matmul %277, %280, %cst_157 {dimension_numbers = #tpu.dot_dimension_numbers<[1], [0], [0], [1], [0, 0, 1, 1], [], []>} : vector<8x128xf32>, vector<128x128xf32>, vector<8x128xf32> -> vector<8x128xf32>
    %282 = arith.addf %279, %281 : vector<8x128xf32>
    %cst_158 = arith.constant 0.000000e+00 : f32
    %283 = vector.broadcast %cst_158 : f32 to vector<8x128xf32>
    %284 = arith.cmpf ogt, %282, %283 : vector<8x128xf32>
    %285 = arith.extui %284 : vector<8x128xi1> to vector<8x128xi32>
    %286 = arith.sitofp %285 : vector<8x128xi32> to vector<8x128xf32>
    %c5_159 = arith.constant 5 : index
    %c0_160 = arith.constant 0 : index
    %c0_161 = arith.constant 0 : index
    %287 = vector.load %arg12[%c5_159, %c0_160, %c0_161] : memref<8x8x128xf32, #tpu.memory_space<vmem>>, vector<1x8x128xf32>
    %288 = vector.shape_cast %287 : vector<1x8x128xf32> to vector<8x128xf32>
    %289 = vector.shape_cast %286 : vector<8x128xf32> to vector<1x8x128xf32>
    tpu.vector_store %arg12[%c5_159, %c0_160, %c0_161], %289 {strides = array<i32>} : memref<8x8x128xf32, #tpu.memory_space<vmem>>, vector<1x8x128xf32>,
    %c5_162 = arith.constant 5 : index
    %c0_163 = arith.constant 0 : index
    %c0_164 = arith.constant 0 : index
    %290 = vector.load %arg13[%c5_162, %c0_163, %c0_164] : memref<8x8x128xf32, #tpu.memory_space<vmem>>, vector<1x8x128xf32>
    %291 = vector.shape_cast %290 : vector<1x8x128xf32> to vector<8x128xf32>
    %292 = vector.shape_cast %282 : vector<8x128xf32> to vector<1x8x128xf32>
    tpu.vector_store %arg13[%c5_162, %c0_163, %c0_164], %292 {strides = array<i32>} : memref<8x8x128xf32, #tpu.memory_space<vmem>>, vector<1x8x128xf32>,
    %cst_165 = arith.constant 6.500000e-01 : f32
    %293 = vector.broadcast %cst_165 : f32 to vector<8x128xf32>
    %294 = arith.mulf %293, %267 : vector<8x128xf32>
    %cst_166 = arith.constant 1.000000e+00 : f32
    %295 = vector.broadcast %cst_166 : f32 to vector<8x128xf32>
    %296 = arith.mulf %295, %286 : vector<8x128xf32>
    %297 = arith.subf %294, %296 : vector<8x128xf32>
    %cst_167 = arith.constant 8.500000e-01 : f32
    %298 = vector.broadcast %cst_167 : f32 to vector<8x128xf32>
    %299 = arith.mulf %298, %272 : vector<8x128xf32>
    %cst_168 = arith.constant 6.66666651 : f32
    %300 = vector.broadcast %cst_168 : f32 to vector<8x128xf32>
    %301 = arith.mulf %300, %286 : vector<8x128xf32>
    %302 = arith.addf %299, %301 : vector<8x128xf32>
    %cst_169 = arith.constant 0.899999976 : f32
    %303 = vector.broadcast %cst_169 : f32 to vector<8x128xf32>
    %304 = arith.mulf %303, %277 : vector<8x128xf32>
    %cst_170 = arith.constant 1.000000e+01 : f32
    %305 = vector.broadcast %cst_170 : f32 to vector<8x128xf32>
    %306 = arith.mulf %305, %272 : vector<8x128xf32>
    %307 = arith.addf %304, %306 : vector<8x128xf32>
    %308 = vector.extract_strided_slice %108 {offsets = [48, 0], sizes = [8, 128], strides = [1, 1]} : vector<64x128xf32> to vector<8x128xf32>
    %309 = arith.addf %308, %297 : vector<8x128xf32>
    %c0_171 = arith.constant 0 : index
    %c0_172 = arith.constant 0 : index
    %310 = vector.load %arg10[%c0_171, %c0_172] : memref<128x128xf32, #tpu.memory_space<vmem>>, vector<128x128xf32>
    %cst_173 = arith.constant dense<0.000000e+00> : vector<8x128xf32>
    %311 = tpu.matmul %307, %310, %cst_173 {dimension_numbers = #tpu.dot_dimension_numbers<[1], [0], [0], [1], [0, 0, 1, 1], [], []>} : vector<8x128xf32>, vector<128x128xf32>, vector<8x128xf32> -> vector<8x128xf32>
    %312 = arith.addf %309, %311 : vector<8x128xf32>
    %cst_174 = arith.constant 0.000000e+00 : f32
    %313 = vector.broadcast %cst_174 : f32 to vector<8x128xf32>
    %314 = arith.cmpf ogt, %312, %313 : vector<8x128xf32>
    %315 = arith.extui %314 : vector<8x128xi1> to vector<8x128xi32>
    %316 = arith.sitofp %315 : vector<8x128xi32> to vector<8x128xf32>
    %c6_175 = arith.constant 6 : index
    %c0_176 = arith.constant 0 : index
    %c0_177 = arith.constant 0 : index
    %317 = vector.load %arg12[%c6_175, %c0_176, %c0_177] : memref<8x8x128xf32, #tpu.memory_space<vmem>>, vector<1x8x128xf32>
    %318 = vector.shape_cast %317 : vector<1x8x128xf32> to vector<8x128xf32>
    %319 = vector.shape_cast %316 : vector<8x128xf32> to vector<1x8x128xf32>
    tpu.vector_store %arg12[%c6_175, %c0_176, %c0_177], %319 {strides = array<i32>} : memref<8x8x128xf32, #tpu.memory_space<vmem>>, vector<1x8x128xf32>,
    %c6_178 = arith.constant 6 : index
    %c0_179 = arith.constant 0 : index
    %c0_180 = arith.constant 0 : index
    %320 = vector.load %arg13[%c6_178, %c0_179, %c0_180] : memref<8x8x128xf32, #tpu.memory_space<vmem>>, vector<1x8x128xf32>
    %321 = vector.shape_cast %320 : vector<1x8x128xf32> to vector<8x128xf32>
    %322 = vector.shape_cast %312 : vector<8x128xf32> to vector<1x8x128xf32>
    tpu.vector_store %arg13[%c6_178, %c0_179, %c0_180], %322 {strides = array<i32>} : memref<8x8x128xf32, #tpu.memory_space<vmem>>, vector<1x8x128xf32>,
    %cst_181 = arith.constant 6.500000e-01 : f32
    %323 = vector.broadcast %cst_181 : f32 to vector<8x128xf32>
    %324 = arith.mulf %323, %297 : vector<8x128xf32>
    %cst_182 = arith.constant 1.000000e+00 : f32
    %325 = vector.broadcast %cst_182 : f32 to vector<8x128xf32>
    %326 = arith.mulf %325, %316 : vector<8x128xf32>
    %327 = arith.subf %324, %326 : vector<8x128xf32>
    %cst_183 = arith.constant 8.500000e-01 : f32
    %328 = vector.broadcast %cst_183 : f32 to vector<8x128xf32>
    %329 = arith.mulf %328, %302 : vector<8x128xf32>
    %cst_184 = arith.constant 6.66666651 : f32
    %330 = vector.broadcast %cst_184 : f32 to vector<8x128xf32>
    %331 = arith.mulf %330, %316 : vector<8x128xf32>
    %332 = arith.addf %329, %331 : vector<8x128xf32>
    %cst_185 = arith.constant 0.899999976 : f32
    %333 = vector.broadcast %cst_185 : f32 to vector<8x128xf32>
    %334 = arith.mulf %333, %307 : vector<8x128xf32>
    %cst_186 = arith.constant 1.000000e+01 : f32
    %335 = vector.broadcast %cst_186 : f32 to vector<8x128xf32>
    %336 = arith.mulf %335, %302 : vector<8x128xf32>
    %337 = arith.addf %334, %336 : vector<8x128xf32>
    %338 = vector.extract_strided_slice %108 {offsets = [56, 0], sizes = [8, 128], strides = [1, 1]} : vector<64x128xf32> to vector<8x128xf32>
    %339 = arith.addf %338, %327 : vector<8x128xf32>
    %c0_187 = arith.constant 0 : index
    %c0_188 = arith.constant 0 : index
    %340 = vector.load %arg10[%c0_187, %c0_188] : memref<128x128xf32, #tpu.memory_space<vmem>>, vector<128x128xf32>
    %cst_189 = arith.constant dense<0.000000e+00> : vector<8x128xf32>
    %341 = tpu.matmul %337, %340, %cst_189 {dimension_numbers = #tpu.dot_dimension_numbers<[1], [0], [0], [1], [0, 0, 1, 1], [], []>} : vector<8x128xf32>, vector<128x128xf32>, vector<8x128xf32> -> vector<8x128xf32>
    %342 = arith.addf %339, %341 : vector<8x128xf32>
    %cst_190 = arith.constant 0.000000e+00 : f32
    %343 = vector.broadcast %cst_190 : f32 to vector<8x128xf32>
    %344 = arith.cmpf ogt, %342, %343 : vector<8x128xf32>
    %345 = arith.extui %344 : vector<8x128xi1> to vector<8x128xi32>
    %346 = arith.sitofp %345 : vector<8x128xi32> to vector<8x128xf32>
    %c7_191 = arith.constant 7 : index
    %c0_192 = arith.constant 0 : index
    %c0_193 = arith.constant 0 : index
    %347 = vector.load %arg12[%c7_191, %c0_192, %c0_193] : memref<8x8x128xf32, #tpu.memory_space<vmem>>, vector<1x8x128xf32>
    %348 = vector.shape_cast %347 : vector<1x8x128xf32> to vector<8x128xf32>
    %349 = vector.shape_cast %346 : vector<8x128xf32> to vector<1x8x128xf32>
    tpu.vector_store %arg12[%c7_191, %c0_192, %c0_193], %349 {strides = array<i32>} : memref<8x8x128xf32, #tpu.memory_space<vmem>>, vector<1x8x128xf32>,
    %c7_194 = arith.constant 7 : index
    %c0_195 = arith.constant 0 : index
    %c0_196 = arith.constant 0 : index
    %350 = vector.load %arg13[%c7_194, %c0_195, %c0_196] : memref<8x8x128xf32, #tpu.memory_space<vmem>>, vector<1x8x128xf32>
    %351 = vector.shape_cast %350 : vector<1x8x128xf32> to vector<8x128xf32>
    %352 = vector.shape_cast %342 : vector<8x128xf32> to vector<1x8x128xf32>
    tpu.vector_store %arg13[%c7_194, %c0_195, %c0_196], %352 {strides = array<i32>} : memref<8x8x128xf32, #tpu.memory_space<vmem>>, vector<1x8x128xf32>,
    %c0_197 = arith.constant 0 : index
    %c0_198 = arith.constant 0 : index
    %353 = vector.load %arg21[%c0_197, %c0_198] : memref<8x128xf32, #tpu.memory_space<vmem>>, vector<8x128xf32>
    tpu.vector_store %arg21[%c0_197, %c0_198], %327 {strides = array<i32>} : memref<8x128xf32, #tpu.memory_space<vmem>>, vector<8x128xf32>,
    %c0_199 = arith.constant 0 : index
    %c0_200 = arith.constant 0 : index
    %354 = vector.load %arg22[%c0_199, %c0_200] : memref<8x128xf32, #tpu.memory_space<vmem>>, vector<8x128xf32>
    tpu.vector_store %arg22[%c0_199, %c0_200], %346 {strides = array<i32>} : memref<8x128xf32, #tpu.memory_space<vmem>>, vector<8x128xf32>,
    %c0_201 = arith.constant 0 : index
    %c0_202 = arith.constant 0 : index
    %355 = vector.load %arg23[%c0_201, %c0_202] : memref<8x128xf32, #tpu.memory_space<vmem>>, vector<8x128xf32>
    tpu.vector_store %arg23[%c0_201, %c0_202], %337 {strides = array<i32>} : memref<8x128xf32, #tpu.memory_space<vmem>>, vector<8x128xf32>,
    %c0_203 = arith.constant 0 : index
    %c0_204 = arith.constant 0 : index
    %356 = vector.load %arg24[%c0_203, %c0_204] : memref<8x128xf32, #tpu.memory_space<vmem>>, vector<8x128xf32>
    tpu.vector_store %arg24[%c0_203, %c0_204], %332 {strides = array<i32>} : memref<8x128xf32, #tpu.memory_space<vmem>>, vector<8x128xf32>,
    %c2_i32 = arith.constant 2 : i32
    %357 = arith.cmpi eq, %arg1, %c2_i32 : i32
    %358 = arith.extui %357 : i1 to i32
    %c0_i32_205 = arith.constant 0 : i32
    %359 = arith.cmpi ne, %358, %c0_i32_205 : i32
    scf.if %359 {
      %c0_206 = arith.constant 0 : index
      %c0_207 = arith.constant 0 : index
      %360 = vector.load %arg14[%c0_206, %c0_207] : memref<8x64xf32, #tpu.memory_space<vmem>>, vector<8x64xf32>
      tpu.vector_store %arg14[%c0_206, %c0_207], %100 {strides = array<i32>} : memref<8x64xf32, #tpu.memory_space<vmem>>, vector<8x64xf32>,
      %c0_208 = arith.constant 0 : index
      %c0_209 = arith.constant 0 : index
      %361 = vector.load %arg15[%c0_208, %c0_209] : memref<8x64xf32, #tpu.memory_space<vmem>>, vector<8x64xf32>
      tpu.vector_store %arg15[%c0_208, %c0_209], %95 {strides = array<i32>} : memref<8x64xf32, #tpu.memory_space<vmem>>, vector<8x64xf32>,
      %c0_210 = arith.constant 0 : index
      %c0_211 = arith.constant 0 : index
      %362 = vector.load %arg16[%c0_210, %c0_211] : memref<8x128xf32, #tpu.memory_space<vmem>>, vector<8x128xf32>
      tpu.vector_store %arg16[%c0_210, %c0_211], %327 {strides = array<i32>} : memref<8x128xf32, #tpu.memory_space<vmem>>, vector<8x128xf32>,
      %c0_212 = arith.constant 0 : index
      %c0_213 = arith.constant 0 : index
      %363 = vector.load %arg17[%c0_212, %c0_213] : memref<8x128xf32, #tpu.memory_space<vmem>>, vector<8x128xf32>
      tpu.vector_store %arg17[%c0_212, %c0_213], %337 {strides = array<i32>} : memref<8x128xf32, #tpu.memory_space<vmem>>, vector<8x128xf32>,
      %c0_214 = arith.constant 0 : index
      %c0_215 = arith.constant 0 : index
      %364 = vector.load %arg18[%c0_214, %c0_215] : memref<8x128xf32, #tpu.memory_space<vmem>>, vector<8x128xf32>
      tpu.vector_store %arg18[%c0_214, %c0_215], %332 {strides = array<i32>} : memref<8x128xf32, #tpu.memory_space<vmem>>, vector<8x128xf32>,
    } else {
    }
    return
  }
  func.func @transform_0(%arg0: i32, %arg1: i32) -> (i32, i32, i32) {
    %c0_i32 = arith.constant 0 : i32
    %c0_i32_0 = arith.constant 0 : i32
    return %arg1, %arg0, %c0_i32 : i32, i32, i32
  }
  func.func @transform_1(%arg0: i32, %arg1: i32) -> (i32, i32) {
    %c0_i32 = arith.constant 0 : i32
    %c0_i32_0 = arith.constant 0 : i32
    return %arg0, %c0_i32 : i32, i32
  }
  func.func @transform_2(%arg0: i32, %arg1: i32) -> (i32, i32) {
    %c0_i32 = arith.constant 0 : i32
    %c0_i32_0 = arith.constant 0 : i32
    return %arg0, %c0_i32 : i32, i32
  }
  func.func @transform_3(%arg0: i32, %arg1: i32) -> (i32, i32) {
    %c0_i32 = arith.constant 0 : i32
    %c0_i32_0 = arith.constant 0 : i32
    return %arg0, %c0_i32 : i32, i32
  }
  func.func @transform_4(%arg0: i32, %arg1: i32) -> (i32, i32) {
    %c0_i32 = arith.constant 0 : i32
    %c0_i32_0 = arith.constant 0 : i32
    return %arg0, %c0_i32 : i32, i32
  }
  func.func @transform_5(%arg0: i32, %arg1: i32) -> (i32, i32) {
    %c0_i32 = arith.constant 0 : i32
    %c0_i32_0 = arith.constant 0 : i32
    return %arg0, %c0_i32 : i32, i32
  }
  func.func @transform_6(%arg0: i32, %arg1: i32) -> (i32, i32) {
    %c0_i32 = arith.constant 0 : i32
    %c0_i32_0 = arith.constant 0 : i32
    return %arg0, %c0_i32 : i32, i32
  }
  func.func @transform_7(%arg0: i32, %arg1: i32) -> (i32, i32) {
    %c0_i32 = arith.constant 0 : i32
    %c0_i32_0 = arith.constant 0 : i32
    %c0_i32_1 = arith.constant 0 : i32
    return %c0_i32, %c0_i32_0 : i32, i32
  }
  func.func @transform_8(%arg0: i32, %arg1: i32) -> (i32, i32) {
    %c0_i32 = arith.constant 0 : i32
    %c0_i32_0 = arith.constant 0 : i32
    %c0_i32_1 = arith.constant 0 : i32
    return %c0_i32, %c0_i32_0 : i32, i32
  }
  func.func @transform_9(%arg0: i32, %arg1: i32) -> (i32, i32) {
    %c0_i32 = arith.constant 0 : i32
    %c0_i32_0 = arith.constant 0 : i32
    %c0_i32_1 = arith.constant 0 : i32
    return %c0_i32, %c0_i32_0 : i32, i32
  }
  func.func @transform_10(%arg0: i32, %arg1: i32) -> (i32, i32, i32) {
    %c0_i32 = arith.constant 0 : i32
    %c0_i32_0 = arith.constant 0 : i32
    return %arg1, %arg0, %c0_i32 : i32, i32, i32
  }
  func.func @transform_11(%arg0: i32, %arg1: i32) -> (i32, i32, i32) {
    %c0_i32 = arith.constant 0 : i32
    %c0_i32_0 = arith.constant 0 : i32
    return %arg1, %arg0, %c0_i32 : i32, i32, i32
  }
  func.func @transform_12(%arg0: i32, %arg1: i32) -> (i32, i32) {
    %c0_i32 = arith.constant 0 : i32
    %c0_i32_0 = arith.constant 0 : i32
    return %arg0, %c0_i32 : i32, i32
  }
  func.func @transform_13(%arg0: i32, %arg1: i32) -> (i32, i32) {
    %c0_i32 = arith.constant 0 : i32
    %c0_i32_0 = arith.constant 0 : i32
    return %arg0, %c0_i32 : i32, i32
  }
  func.func @transform_14(%arg0: i32, %arg1: i32) -> (i32, i32) {
    %c0_i32 = arith.constant 0 : i32
    %c0_i32_0 = arith.constant 0 : i32
    return %arg0, %c0_i32 : i32, i32
  }
  func.func @transform_15(%arg0: i32, %arg1: i32) -> (i32, i32) {
    %c0_i32 = arith.constant 0 : i32
    %c0_i32_0 = arith.constant 0 : i32
    return %arg0, %c0_i32 : i32, i32
  }
  func.func @transform_16(%arg0: i32, %arg1: i32) -> (i32, i32) {
    %c0_i32 = arith.constant 0 : i32
    %c0_i32_0 = arith.constant 0 : i32
    return %arg0, %c0_i32 : i32, i32
  }
}

</mosaic_0001>

<bundles_post_ra>
// kernel: lif_rec_forward_seq.1
= control target key start
LH: loop header
LB: loop body
LE: loop exit
PB: predicated region body
PF: predicated region fallthrough
CT: control target
= control target key end

     0   :  { %s2631_s0 = inlined_call_operand.vmem [shape: f32[24,8,64], index: 0, kind: input, shape index: {}]   ;;  %s2632_s1 = inlined_call_operand.vmem [shape: f32[8,64], index: 1, kind: input, shape index: {}]   ;;  %s2633_s2 = inlined_call_operand.vmem [shape: f32[8,64], index: 2, kind: input, shape index: {}]   ;;  %s2634_s3 = inlined_call_operand.vmem [shape: f32[8,128], index: 3, kind: input, shape index: {}]   ;;  %s2635_s4 = inlined_call_operand.vmem [shape: f32[8,128], index: 4, kind: input, shape index: {}]   ;;  %s2636_s5 = inlined_call_operand.vmem [shape: f32[8,128], index: 5, kind: input, shape index: {}]   ;;  %s2637_s6 = inlined_call_operand.vmem [shape: f32[8,128], index: 6, kind: input, shape index: {}]   ;;  %s2638_s7 = inlined_call_operand.vmem [shape: f32[64,128], index: 7, kind: input, shape index: {}]   ;;  %s2639_s8 = inlined_call_operand.vmem [shape: f32[128,128], index: 8, kind: input, shape index: {}]   ;;  %s2640_s9 = inlined_call_operand.vmem [shape: f32[1,128], index: 9, kind: input, shape index: {}]   ;;  %s2641_s10 = inlined_call_operand.vmem [shape: f32[24,8,128], index: 10, kind: output, shape index: {0}]   ;;  %s2642_s11 = inlined_call_operand.hbm [shape: f32[24,8,128], index: 11, kind: output, shape index: {1}]   ;;  %s2643_s12 = inlined_call_operand.hbm [shape: f32[8,64], index: 12, kind: output, shape index: {2}]   ;;  %s2644_s13 = inlined_call_operand.hbm [shape: f32[8,64], index: 13, kind: output, shape index: {3}]   ;;  %s2645_s14 = inlined_call_operand.hbm [shape: f32[8,128], index: 14, kind: output, shape index: {4}]   ;;  %s2646_s15 = inlined_call_operand.hbm [shape: f32[8,128], index: 15, kind: output, shape index: {5}]   ;;  %s2647_s16 = inlined_call_operand.hbm [shape: f32[8,128], index: 16, kind: output, shape index: {6}]  }
   0x1   :  { %2656 = sst [smem:[#allocation29_spill]] %s2631_s0 }
   0x2   :  { %2657 = sst [smem:[#allocation30_spill]] %s2632_s1 }
   0x3   :  { %2658 = sst [smem:[#allocation31_spill]] %s2633_s2 }
   0x4   :  { %2659 = sst [smem:[#allocation32_spill]] %s2644_s13 }
   0x5   :  { %2660 = sst [smem:[#allocation33_spill]] %s2646_s15 }
   0x6   :  { %2661 = sst [smem:[#allocation34_spill]] %s2647_s16 }
   0x7   :  { %22 = vsyncpa [#allocation9], 0 }
   0x8   :  { %24 = vsyncpa [#allocation9 + $0x1], 0 }
   0x9   :  { %25 = vsyncpa [#allocation11], 0 }
   0xa   :  { %26 = vsyncpa [#allocation14], 0 }
   0xb   :  { %27 = vsyncpa [#allocation17], 0  ;;  %s2140_s21 = smov 0   ;;  %s2142_s22 = smov 0  }
   0xc   :  { %s2144_s23 = smov 0   ;;  %s2146_s24 = smov 0  }
   0xd   :  { %s2148_s25 = smov 0   ;;  %s2150_s26 = smov 0  }
   0xe LB: > { %2662 = sst [smem:[#allocation22_spill]] %s2025_s21  ;;  %s1650_s27 = sadd.s32 4294967295, %s2045_s26   ;;  %s2045_s26 = sphi %s2150_s26, %s33_s26   ;;  %s2041_s25 = sphi %s2148_s25, %s2685_s25   ;;  %s2037_s24 = sphi %s2146_s24, %s2684_s24   ;;  %s2033_s23 = sphi %s2144_s23, %s2683_s23   ;;  %s2029_s22 = sphi %s2142_s22, %s2687_s22   ;;  %s2025_s21 = sphi %s2140_s21, %s2686_s21  }
   0xf   : > { %2663 = sst [smem:[#allocation23_spill]] %s2033_s23  ;;  %s1651_s28 = sadd.s32 4294967294, %s2045_s26  }
  0x10   : > { %2664 = sst [smem:[#allocation24_spill]] %s2041_s25  ;;  %s42_s29 = sadd.s32 1, %s2041_s25 }
  0x11   : > { %2665 = sst [smem:[#allocation25_spill]] %s2045_s26  ;;  %s329_s30 = sadd.s32 1, %s2033_s23 }
  0x12   : > { %p43_p0 = scmp.ge.s32.totalorder %s42_s29, 3  ;;  %p339_p1 = scmp.ne.s32.totalorder %s2033_s23, %s2029_s22 }
  0x13   : > { %p2176_p2 = scmp.eq.s32.totalorder %s1650_s27, 2  ;;  %p345_p3 = scmp.ne.s32.totalorder %s2029_s22, %s2025_s21 }
  0x14   : > { %s2689_s29 = smov (%p43_p0, %s42_s29), 0  ;;  %p346_p5 = scmp.eq.s32.totalorder %s1651_s28, 2 }
  0x15   : > { %2667 = sst [smem:[#allocation26_spill]] %s2689_s29  ;;  %p2186_p4 = por %p2176_p2, %p339_p1 }
  0x16   : > { %s324_s18 = ssub.s32 %s2041_s25, %s2689_s29  ;;  %p1660_p6 = scmp.ge.s32.totalorder %s2045_s26, 1 }
  0x17   : > { %p327_p7 = scmp.eq.s32.totalorder %s324_s18, 0  ;;  %p2193_p8 = por %p346_p5, %p345_p3 }
  0x18   : > { %p557_p9 = scmp.lt.s32.totalorder %s2045_s26, 4 }
  0x19   : > { %s2669_s19 = scalar_select %p2193_p8, 1, 0 }
  0x1a   : > { %s2199_s20 = scalar_select %p327_p7, %s2033_s23, %s329_s30  }
  0x1b   : > { %2670 = sst [smem:[#allocation27_spill]] %s2669_s19  ;;  %p558_p10 = pnand %p1660_p6, %p557_p9 }
  0x1c   : > { %2671 = sst [smem:[#allocation28_spill]] %s2199_s20  ;;  %s2655_s27 = sand.u32 (!%p558_p10), 1, %s2029_s22  }
  0x1d   : > { %561 = sbr.rel (%p558_p10) target bundleno = 688 (0x2b0), region = 60  ;;  %s1662_s21 = sshll.u32 (!%p558_p10), %s2037_s24, 3 }
  0x1e   : > { %s1661_s16 = sshll.u32 (!%p558_p10), %s2655_s27, 6  ;;  %p643_p11 = scmp.lt.s32.totalorder (!%p558_p10), %s1662_s21, 23 }
  0x1f   : > { %s2672_s25 = sld [smem:[#allocation29_spill]] (!%p558_p10)  ;;  %s2215_s23 = scalar_lea.vmem (!%p558_p10), [#allocation8], %s1661_s16 }
  0x20   : > { %p1666_p12 = scmp.ne.s32.totalorder (!%p558_p10), %s2037_s24, 0 }
  0x22   : > { %s2691_s21 = smov (!%p643_p11, %s1662_s21), 23  ;;  %688 = sbr.rel (%p1666_p12) target bundleno = 46 (0x2e), region = 64 }
  0x23   : > { %s1663_s28 = sshll.u32 %s2691_s21, 3  ;;  %s2673_s1 = sld [smem:[#allocation30_spill]] (!%p1666_p12) }
  0x24   : > { %s2213_s20 = scalar_lea.vmem %s2641_s10, %s1663_s28  ;;  %s2674_s2 = sld [smem:[#allocation31_spill]] (!%p1666_p12) }
  0x25   : > { %s2208_s15 = scalar_lea.vmem %s2672_s25, %s1663_s28 }
  0x27   : > { %vm690_vm0 = vcmask 523264   ;;  %v694_v2 = vld [vmem:[%s2634_s3] sm:$0xff] }
  0x28   : > { %v696_v3 = vld [vmem:[%s2635_s4] sm:$0xff]  ;;  %695 = vst [vmem:[#allocation4] sm:$0xff] %v694_v2 }
  0x29   : > { %v689_v0 = vld [vmem:[%s2673_s1] sm:$0xff]  ;;  %697 = vst [vmem:[#allocation5] sm:$0xff] %v696_v3 }
  0x2a   : > { %v692_v1 = vld [vmem:[%s2674_s2] sm:$0xff]  ;;  %691 = vst.msk [vmem:[#allocation2] sm:$0xff] %vm690_vm0, %v689_v0 }
  0x2b   : > { %693 = vst.msk [vmem:[#allocation3] sm:$0xff] %vm690_vm0, %v692_v1  ;;  %v698_v4 = vld [vmem:[%s2636_s5] sm:$0xff] }
  0x2c   : > { %v700_v5 = vld [vmem:[%s2637_s6] sm:$0xff]  ;;  %699 = vst [vmem:[#allocation6] sm:$0xff] %v698_v4 }
  0x2d   : > { %701 = vst [vmem:[#allocation7] sm:$0xff] %v700_v5 }
  0x2e PF: > { %v2239_v6 = vld [vmem:[%s2639_s8 + $0x78] sm:$0xff]  ;;  %v2244_v7 = vld [vmem:[%s2639_s8 + $0x70] sm:$0xff]  ;;  %v2251_v8 = vld [vmem:[%s2639_s8 + $0x68] sm:$0xff]  ;;  %vm767_vm1 = vcmask 523264   ;;  %p1704_p13 = scmp.ne.s32.totalorder %s2037_s24, 2 }
  0x2f   : > { %876 = vmatpush.msra.mxu1 %v2239_v6  ;;  %927 = vmatpush.msra.mxu2 %v2239_v6  ;;  %v777_v9 = vld [vmem:[%s2638_s7 + $0x38] sm:$0xff]  ;;  %v776_v10 = vld [vmem:[%s2638_s7 + $0x30] sm:$0xff]  ;;  %v2265_v11 = vld [vmem:[%s2639_s8 + $0x60] sm:$0xff] }
  0x30   : > { %980 = vmatpush.msra.mxu3 %v2239_v6  ;;  %814 = vmatpush.msra.mxu0 %v777_v9  ;;  %v775_v12 = vld [vmem:[%s2638_s7 + $0x28] sm:$0xff]  ;;  %v2276_v13 = vld [vmem:[%s2639_s8 + $0x58] sm:$0xff]  ;;  %v774_v14 = vld [vmem:[%s2638_s7 + $0x20] sm:$0xff] }
  0x31   : > { %877 = vmatpush.msra.mxu1 %v2244_v7  ;;  %928 = vmatpush.msra.mxu2 %v2244_v7  ;;  %v2287_v15 = vld [vmem:[%s2639_s8 + $0x50] sm:$0xff]  ;;  %v702_v16 = vld [vmem:[#allocation2] sm:$0xff]  ;;  %v773_v18 = vld [vmem:[%s2638_s7 + $0x18] sm:$0xff] }
  0x32   : > { %981 = vmatpush.msra.mxu3 %v2244_v7  ;;  %815 = vmatpush.msra.mxu0 %v776_v10  ;;  %v703_v17 = vld [vmem:[#allocation3] sm:$0xff]  ;;  %v704_v19 = vld [vmem:[%s2208_s15] sm:$0xff]  ;;  %v772_v22 = vld [vmem:[%s2638_s7 + $0x10] sm:$0xff]  ;;  %v708_v23 = vmul.f32 0.9, %v702_v16 }
  0x33   : > { %878 = vmatpush.msra.mxu1 %v2251_v8  ;;  %929 = vmatpush.msra.mxu2 %v2251_v8  ;;  %v2299_v20 = vld [vmem:[%s2639_s8 + $0x48] sm:$0xff]  ;;  %v2304_v21 = vld [vmem:[%s2639_s8 + $0x40] sm:$0xff]  ;;  %v709_v24 = vmul.f32 10.0, %v703_v17  ;;  %v705_v27 = vmul.f32 0.85, %v703_v17  ;;  %v2318_v30 = vld [vmem:[#allocation5] sm:$0xff] }
  0x34   : > { %982 = vmatpush.msra.mxu3 %v2251_v8  ;;  %816 = vmatpush.msra.mxu0 %v775_v12  ;;  %v849_v25 = vld [vmem:[#allocation6] sm:$0xff]  ;;  %v850_v26 = vld [vmem:[#allocation7] sm:$0xff]  ;;  %v706_v28 = vmul.f32 6.6666665, %v704_v19  ;;  %v2323_v31 = vld [vmem:[%s2639_s8 + $0x38] sm:$0xff] }
  0x35   : > { %879 = vmatpush.msra.mxu1 %v2265_v11  ;;  %930 = vmatpush.msra.mxu2 %v2265_v11  ;;  %v771_v29 = vld [vmem:[%s2638_s7 + $0x8] sm:$0xff]  ;;  %v770_v32 = vld [vmem:[%s2638_s7] sm:$0xff]  ;;  %v856_v33 = vmul.f32 0.9, %v849_v25  ;;  %v857_v34 = vmul.f32 10.0, %v850_v26  ;;  %v2334_v35 = vld [vmem:[%s2639_s8 + $0x30] sm:$0xff]  ;;  %v710_v36 = vadd.f32 %v709_v24, %v708_v23 }
  0x36   : > { %983 = vmatpush.msra.mxu3 %v2265_v11  ;;  %817 = vmatpush.msra.mxu0 %v774_v14  ;;  %v853_v37 = vmul.f32 0.85, %v850_v26  ;;  %v854_v38 = vmul.f32 6.6666665, %v2318_v30  ;;  %v707_v39 = vadd.f32 %v706_v28, %v705_v27  ;;  %v1667_v40 = vld [vmem:[%s2208_s15 + $0x8] sm:$0xff]  ;;  %v2352_v44 = vld [vmem:[%s2639_s8 + $0x20] sm:$0xff] }
  0x37   : > { %880 = vmatpush.msra.mxu1 %v2276_v13  ;;  %931 = vmatpush.msra.mxu2 %v2276_v13  ;;  %v2344_v41 = vld [vmem:[%s2639_s8 + $0x28] sm:$0xff]  ;;  %v858_v42 = vadd.f32 %v857_v34, %v856_v33  ;;  %v714_v43 = vmul.f32 6.6666665, %v1667_v40  ;;  %v716_v46 = vmul.f32 0.9, %v710_v36  ;;  %v2363_v49 = vld [vmem:[%s2639_s8 + $0x18] sm:$0xff] }
  0x38   : > { %984 = vmatpush.msra.mxu3 %v2276_v13  ;;  %818 = vmatpush.msra.mxu0 %v773_v18  ;;  %v2355_v45 = vadd.f32 %v854_v38, %v853_v37  ;;  %v717_v47 = vmul.f32 10.0, %v707_v39  ;;  %v713_v48 = vmul.f32 0.85, %v707_v39  ;;  %v2372_v50 = vld [vmem:[%s2639_s8 + $0x10] sm:$0xff]  ;;  %v2384_v55 = vld [vmem:[%s2639_s8 + $0x8] sm:$0xff]  ;;  %v2393_v56 = vld [vmem:[%s2639_s8] sm:$0xff] }
  0x39   : > { %881 = vmatpush.msra.mxu1 %v2287_v15  ;;  %932 = vmatpush.msra.mxu2 %v2287_v15  ;;  %v907_v51 = vmul.f32 0.9, %v858_v42  ;;  %v1668_v61 = vld [vmem:[%s2208_s15 + $0x10] sm:$0xff]  ;;  %v2494_v4 = vld [vmem:[%s2640_s9] ss:$0 sm:$0xff]  ;;  %v2047_v24 = vmov 0.0  }
  0x3a   : > { %985 = vmatpush.msra.mxu3 %v2287_v15  ;;  %819 = vmatpush.msra.mxu0 %v772_v22  ;;  %v908_v52 = vmul.f32 10.0, %v2355_v45  ;;  %v718_v53 = vadd.f32 %v717_v47, %v716_v46  ;;  %v2375_v54 = vadd.f32 %v714_v43, %v713_v48  ;;  %v722_v63 = vmul.f32 6.6666665, %v1668_v61  ;;  %v847_v1 = vld [vmem:[#allocation4] sm:$0xff] }
  0x3b   : > { %882 = vmatpush.msra.mxu1 %v2299_v20  ;;  %933 = vmatpush.msra.mxu2 %v2299_v20  ;;  %v851_v5 = vmul.f32 0.65, %v847_v1  ;;  %v904_v23 = vmul.f32 0.85, %v2355_v45 }
  0x3c   : > { %986 = vmatpush.msra.mxu3 %v2299_v20  ;;  %820 = vmatpush.msra.mxu0 %v771_v29  ;;  %v2395_v57 = vadd.f32 %v908_v52, %v907_v51  ;;  %v724_v58 = vmul.f32 0.9, %v718_v53  ;;  %v725_v59 = vmul.f32 10.0, %v2375_v54  ;;  %v721_v62 = vmul.f32 0.85, %v2375_v54  ;;  %v1671_v51 = vld [vmem:[%s2208_s15 + $0x28] sm:$0xff] }
  0x3d   : > { %883 = vmatpush.msra.mxu1 %v2304_v21  ;;  %934 = vmatpush.msra.mxu2 %v2304_v21  ;;  %v852_v14 = vsub.f32 %v851_v5, %v2318_v30 }
  0x3e   : > { %987 = vmatpush.msra.mxu3 %v2304_v21  ;;  %821 = vmatpush.msra.mxu0 %v770_v32  ;;  %v2407_v60 = vadd.f32 %v725_v59, %v724_v58  ;;  %v723_v0 = vadd.f32 %v722_v63, %v721_v62 }
  0x3f   : > { %884 = vmatpush.msra.mxu1 %v2323_v31  ;;  %935 = vmatpush.msra.mxu2 %v2323_v31 }
  0x40   : > { %988 = vmatpush.msra.mxu3 %v2323_v31  ;;  %1674 = vmatmul.msk.f32.vlgmr.msra.gmra.mxu0 %vm767_vm1, %v710_v36  ;;  %v732_v2 = vmul.f32 0.9, %v2407_v60  ;;  %v733_v3 = vmul.f32 10.0, %v723_v0 }
  0x41   : > { %885 = vmatpush.msra.mxu1 %v2334_v35  ;;  %936 = vmatpush.msra.mxu2 %v2334_v35 }
  0x42   : > { %989 = vmatpush.msra.mxu3 %v2334_v35  ;;  %1192 = vmatpush.msrb.mxu0 %v2239_v6 }
  0x43   : > { %886 = vmatpush.msra.mxu1 %v2344_v41  ;;  %937 = vmatpush.msra.mxu2 %v2344_v41 }
  0x44   : > { %990 = vmatpush.msra.mxu3 %v2344_v41  ;;  %1193 = vmatpush.msrb.mxu0 %v2244_v7 }
  0x45   : > { %887 = vmatpush.msra.mxu1 %v2352_v44  ;;  %938 = vmatpush.msra.mxu2 %v2352_v44 }
  0x46   : > { %991 = vmatpush.msra.mxu3 %v2352_v44  ;;  %1194 = vmatpush.msrb.mxu0 %v2251_v8 }
  0x47   : > { %888 = vmatpush.msra.mxu1 %v2363_v49  ;;  %939 = vmatpush.msra.mxu2 %v2363_v49 }
  0x48   : > { %992 = vmatpush.msra.mxu3 %v2363_v49  ;;  %1675 = vmatmul.msk.f32.gmra.mxu0 %vm767_vm1, %v718_v53  ;;  %v746_v53 = vmul.f32 6.6666665, %v1671_v51 }
  0x49   : > { %889 = vmatpush.msra.mxu1 %v2372_v50  ;;  %940 = vmatpush.msra.mxu2 %v2372_v50 }
  0x4a   : > { %993 = vmatpush.msra.mxu3 %v2372_v50  ;;  %1195 = vmatpush.msrb.mxu0 %v2265_v11 }
  0x4b   : > { %890 = vmatpush.msra.mxu1 %v2384_v55  ;;  %941 = vmatpush.msra.mxu2 %v2384_v55 }
  0x4c   : > { %994 = vmatpush.msra.mxu3 %v2384_v55  ;;  %1196 = vmatpush.msrb.mxu0 %v2276_v13 }
  0x4d   : > { %891 = vmatpush.msra.mxu1 %v2393_v56  ;;  %942 = vmatpush.msra.mxu2 %v2393_v56 }
  0x4e   : > { %892 = vmatmul.f32.vlgmr.msra.gmra.mxu1 %v858_v42  ;;  %943 = vmatmul.f32.vlgmr.msra.gmra.mxu2 %v2395_v57 }
  0x4f   : > { %1033 = vmatpush.msrb.mxu1 %v2239_v6  ;;  %995 = vmatpush.msra.mxu3 %v2393_v56 }
  0x50   : > { %1086 = vmatpush.msrb.mxu2 %v2239_v6  ;;  %1676 = vmatmul.msk.f32.gmra.mxu0 %vm767_vm1, %v2407_v60 }
  0x51   : > { %1139 = vmatpush.msrb.mxu3 %v2239_v6  ;;  %1034 = vmatpush.msrb.mxu1 %v2244_v7 }
  0x52   : > { %1087 = vmatpush.msrb.mxu2 %v2244_v7  ;;  %1197 = vmatpush.msrb.mxu0 %v2287_v15 }
  0x53   : > { %1035 = vmatpush.msrb.mxu1 %v2251_v8  ;;  %1140 = vmatpush.msrb.mxu3 %v2244_v7 }
  0x54   : > { %1088 = vmatpush.msrb.mxu2 %v2251_v8  ;;  %1198 = vmatpush.msrb.mxu0 %v2299_v20 }
  0x55   : > { %1036 = vmatpush.msrb.mxu1 %v2265_v11  ;;  %1141 = vmatpush.msrb.mxu3 %v2251_v8 }
  0x56   : > { %1089 = vmatpush.msrb.mxu2 %v2265_v11  ;;  %1199 = vmatpush.msrb.mxu0 %v2304_v21 }
  0x57   : > { %1037 = vmatpush.msrb.mxu1 %v2276_v13  ;;  %1142 = vmatpush.msrb.mxu3 %v2265_v11 }
  0x58   : > { %1090 = vmatpush.msrb.mxu2 %v2276_v13  ;;  %1200 = vmatpush.msrb.mxu0 %v2323_v31 }
  0x59   : > { %1038 = vmatpush.msrb.mxu1 %v2287_v15  ;;  %1143 = vmatpush.msrb.mxu3 %v2276_v13 }
  0x5a   : > { %1091 = vmatpush.msrb.mxu2 %v2287_v15  ;;  %1201 = vmatpush.msrb.mxu0 %v2334_v35 }
  0x5b   : > { %1039 = vmatpush.msrb.mxu1 %v2299_v20  ;;  %1144 = vmatpush.msrb.mxu3 %v2287_v15 }
  0x5c   : > { %1092 = vmatpush.msrb.mxu2 %v2299_v20  ;;  %1202 = vmatpush.msrb.mxu0 %v2344_v41 }
  0x5d   : > { %1040 = vmatpush.msrb.mxu1 %v2304_v21  ;;  %1145 = vmatpush.msrb.mxu3 %v2299_v20 }
  0x5e   : > { %1093 = vmatpush.msrb.mxu2 %v2304_v21  ;;  %1203 = vmatpush.msrb.mxu0 %v2352_v44 }
  0x5f   : > { %1041 = vmatpush.msrb.mxu1 %v2323_v31  ;;  %1146 = vmatpush.msrb.mxu3 %v2304_v21 }
  0x60   : > { %1094 = vmatpush.msrb.mxu2 %v2323_v31  ;;  %1204 = vmatpush.msrb.mxu0 %v2363_v49 }
  0x61   : > { %1042 = vmatpush.msrb.mxu1 %v2334_v35  ;;  %1147 = vmatpush.msrb.mxu3 %v2323_v31 }
  0x62   : > { %1095 = vmatpush.msrb.mxu2 %v2334_v35  ;;  %1205 = vmatpush.msrb.mxu0 %v2372_v50 }
  0x63   : > { %1043 = vmatpush.msrb.mxu1 %v2344_v41  ;;  %1148 = vmatpush.msrb.mxu3 %v2334_v35 }
  0x64   : > { %1096 = vmatpush.msrb.mxu2 %v2344_v41  ;;  %1206 = vmatpush.msrb.mxu0 %v2384_v55 }
  0x65   : > { %1044 = vmatpush.msrb.mxu1 %v2352_v44  ;;  %1149 = vmatpush.msrb.mxu3 %v2344_v41 }
  0x66   : > { %1097 = vmatpush.msrb.mxu2 %v2352_v44  ;;  %1207 = vmatpush.msrb.mxu0 %v2393_v56 }
  0x67   : > { %1045 = vmatpush.msrb.mxu1 %v2363_v49  ;;  %1150 = vmatpush.msrb.mxu3 %v2352_v44 }
  0x68   : > { %1098 = vmatpush.msrb.mxu2 %v2363_v49 }
  0x69   : > { %1046 = vmatpush.msrb.mxu1 %v2372_v50  ;;  %1151 = vmatpush.msrb.mxu3 %v2363_v49 }
  0x6a   : > { %1099 = vmatpush.msrb.mxu2 %v2372_v50 }
  0x6b   : > { %1047 = vmatpush.msrb.mxu1 %v2384_v55  ;;  %1152 = vmatpush.msrb.mxu3 %v2372_v50 }
  0x6c   : > { %1100 = vmatpush.msrb.mxu2 %v2384_v55 }
  0x6d   : > { %1048 = vmatpush.msrb.mxu1 %v2393_v56  ;;  %1153 = vmatpush.msrb.mxu3 %v2384_v55 }
  0x6e   : > { %1101 = vmatpush.msrb.mxu2 %v2393_v56 }
  0x6f   : > { %1245 = vmatpush.msra.mxu1 %v2239_v6  ;;  %1154 = vmatpush.msrb.mxu3 %v2393_v56  ;;  %v734_v6 = vadd.f32 %v733_v3, %v732_v2 }
  0x71   : > { %1246 = vmatpush.msra.mxu1 %v2244_v7  ;;  %v1669_v7 = vld [vmem:[%s2208_s15 + $0x18] sm:$0xff]  ;;  %1677 = vmatmul.msk.f32.gmra.mxu0 %vm767_vm1, %v734_v6  ;;  %v740_v12 = vmul.f32 0.9, %v734_v6 }
  0x72   : > { %v730_v10 = vmul.f32 6.6666665, %v1669_v7 }
  0x73   : > { %1247 = vmatpush.msra.mxu1 %v2251_v8  ;;  %v729_v8 = vmul.f32 0.85, %v723_v0 }
  0x75   : > { %1248 = vmatpush.msra.mxu1 %v2265_v11  ;;  %v731_v11 = vadd.f32 %v730_v10, %v729_v8 }
  0x77   : > { %1249 = vmatpush.msra.mxu1 %v2276_v13  ;;  %v737_v45 = vmul.f32 0.85, %v731_v11 }
  0x79   : > { %1250 = vmatpush.msra.mxu1 %v2287_v15  ;;  %v741_v15 = vmul.f32 10.0, %v731_v11 }
  0x7b   : > { %1251 = vmatpush.msra.mxu1 %v2299_v20  ;;  %v742_v16 = vadd.f32 %v741_v15, %v740_v12 }
  0x7d   : > { %1252 = vmatpush.msra.mxu1 %v2304_v21  ;;  %1678 = vmatmul.msk.f32.gmra.mxu0 %vm767_vm1, %v742_v16  ;;  %v902_v21 = vmul.f32 0.65, %v852_v14  ;;  %v748_v48 = vmul.f32 0.9, %v742_v16 }
  0x7f   : > { %1253 = vmatpush.msra.mxu1 %v2323_v31  ;;  %v960_v31 = vmul.f32 0.9, %v2395_v57 }
  0x81   : > { %1254 = vmatpush.msra.mxu1 %v2334_v35 }
  0x83   : > { %1255 = vmatpush.msra.mxu1 %v2344_v41 }
  0x85   : > { %1256 = vmatpush.msra.mxu1 %v2352_v44  ;;  %v1670_v44 = vld [vmem:[%s2208_s15 + $0x20] sm:$0xff] }
  0x86   : > { %v738_v46 = vmul.f32 6.6666665, %v1670_v44 }
  0x87   : > { %1257 = vmatpush.msra.mxu1 %v2363_v49 }
  0x88   : > { %v739_v47 = vadd.f32 %v738_v46, %v737_v45 }
  0x89   : > { %1258 = vmatpush.msra.mxu1 %v2372_v50 }
  0x8a   : > { %v749_v49 = vmul.f32 10.0, %v739_v47  ;;  %v745_v52 = vmul.f32 0.85, %v739_v47 }
  0x8b   : > { %1259 = vmatpush.msra.mxu1 %v2384_v55 }
  0x8c   : > { %v750_v50 = vadd.f32 %v749_v49, %v748_v48  ;;  %v747_v55 = vadd.f32 %v746_v53, %v745_v52 }
  0x8d   : > { %1260 = vmatpush.msra.mxu1 %v2393_v56 }
  0x8e   : > { %1679 = vmatmul.msk.f32.gmra.mxu0 %vm767_vm1, %v750_v50  ;;  %v756_v56 = vmul.f32 0.9, %v750_v50  ;;  %v757_v57 = vmul.f32 10.0, %v747_v55 }
  0x90   : > { %v758_v59 = vadd.f32 %v757_v57, %v756_v56 }
  0x96   : > { %1680 = vmatmul.msk.f32.gmra.mxu0 %vm767_vm1, %v758_v59 }
  0xbd   : > { %v823_v9 = vpop.f32.mrf.mxu0 }
  0xbe   : > { %v824_v13 = vadd.f32 %v2494_v4, %v823_v9 }
  0xc0   : > { %v859_v17 = vadd.f32 %v852_v14, %v824_v13 }
  0xc5   : > { %v826_v19 = vpop.f32.mrf.mxu0 }
  0xc6   : > { %v827_v22 = vadd.f32 %v2494_v4, %v826_v19 }
  0xcb   : > { %v893_v18 = vpop.f32.mrf.mxu1 }
  0xcc   : > { %v896_v20 = vadd.f32 %v893_v18, %v859_v17 }
  0xcd   : > { %v829_v54 = vpop.f32.mrf.mxu0 }
  0xce   : > { %vm897_vm2 = vcmp.gt.f32.partialorder %v896_v20, 0.0  ;;  %901 = vst [vmem:[%s2215_s23] sm:$0xff] %v896_v20  ;;  %v830_v58 = vadd.f32 %v2494_v4, %v829_v54 }
  0xcf   : > { %v1682_v25 = vsel %vm897_vm2, 1.0, %v2047_v24 }
  0xd0   : > { %900 = vst [vmem:[%s2213_s20] sm:$0xff] %v1682_v25  ;;  %v905_v26 = vmul.f32 6.6666665, %v1682_v25  ;;  %v903_v27 = vsub.f32 %v902_v21, %v1682_v25  ;;  %v753_v25 = vmul.f32 0.85, %v747_v55 }
  0xd1   : > { %v944_v28 = vpop.f32.mrf.mxu2 }
  0xd2   : > { %v910_v29 = vadd.f32 %v903_v27, %v827_v22  ;;  %v906_v30 = vadd.f32 %v905_v26, %v904_v23  ;;  %v955_v35 = vmul.f32 0.65, %v903_v27  ;;  %v1672_v23 = vld [vmem:[%s2208_s15 + $0x30] sm:$0xff] }
  0xd3   : > { %v754_v26 = vmul.f32 6.6666665, %v1672_v23 }
  0xd4   : > { %v947_v32 = vadd.f32 %v944_v28, %v910_v29  ;;  %v961_v33 = vmul.f32 10.0, %v906_v30  ;;  %v957_v38 = vmul.f32 0.85, %v906_v30  ;;  %v764_v28 = vmul.f32 0.9, %v758_v59 }
  0xd5   : > { %v755_v27 = vadd.f32 %v754_v26, %v753_v25 }
  0xd6   : > { %vm948_vm3 = vcmp.gt.f32.partialorder %v947_v32, 0.0  ;;  %1685 = vst [vmem:[%s2215_s23 + $0x8] sm:$0xff] %v947_v32  ;;  %v962_v34 = vadd.f32 %v961_v33, %v960_v31  ;;  %v1673_v31 = vld [vmem:[%s2208_s15 + $0x38] sm:$0xff] }
  0xd7   : > { %v1683_v36 = vsel %vm948_vm3, 1.0, %v2047_v24  ;;  %v765_v29 = vmul.f32 10.0, %v755_v27  ;;  %v761_v32 = vmul.f32 0.85, %v755_v27  ;;  %v762_v33 = vmul.f32 6.6666665, %v1673_v31 }
  0xd8   : > { %1684 = vst [vmem:[%s2213_s20 + $0x8] sm:$0xff] %v1683_v36  ;;  %v958_v37 = vmul.f32 6.6666665, %v1683_v36  ;;  %996 = vmatmul.f32.vlgmr.msra.gmra.mxu3 %v962_v34  ;;  %v956_v39 = vsub.f32 %v955_v35, %v1683_v36  ;;  %v1013_v41 = vmul.f32 0.9, %v962_v34 }
  0xd9   : > { %v2523_v30 = vadd.f32 %v765_v29, %v764_v28  ;;  %v2530_v34 = vadd.f32 %v762_v33, %v761_v32 }
  0xda   : > { %v959_v40 = vadd.f32 %v958_v37, %v957_v38  ;;  %v963_v60 = vadd.f32 %v956_v39, %v830_v58  ;;  %v1008_v1 = vmul.f32 0.65, %v956_v39 }
  0xdb   : > { %768 = vst.msk [vmem:[#allocation2] sm:$0xff] %vm767_vm1, %v2523_v30  ;;  %1681 = vmatmul.msk.f32.gmra.mxu0 %vm767_vm1, %v2523_v30 }
  0xdc   : > { %v1014_v42 = vmul.f32 10.0, %v959_v40  ;;  %v1010_v3 = vmul.f32 0.85, %v959_v40  ;;  %769 = vst.msk [vmem:[#allocation3] sm:$0xff] %vm767_vm1, %v2530_v34 }
  0xde   : > { %v1015_v43 = vadd.f32 %v1014_v42, %v1013_v41 }
  0xe0   : > { %1049 = vmatmul.f32.vlgmr.msrb.gmra.mxu1 %v1015_v43  ;;  %v1066_v11 = vmul.f32 0.9, %v1015_v43 }
  0xee   : > { %v832_v62 = vpop.f32.mrf.mxu0 }
  0xef   : > { %v833_v0 = vadd.f32 %v2494_v4, %v832_v62 }
  0xfa   : > { %v835_v35 = vpop.f32.mrf.mxu0 }
  0xfb   : > { %v836_v36 = vadd.f32 %v2494_v4, %v835_v35 }
 0x10b   : > { %v838_v39 = vpop.f32.mrf.mxu0 }
 0x10c   : > { %v839_v41 = vadd.f32 %v2494_v4, %v838_v39 }
 0x15b   : > { %v997_v61 = vpop.f32.mrf.mxu3 }
 0x15c   : > { %v1000_v63 = vadd.f32 %v997_v61, %v963_v60 }
 0x15d   : > { %v1050_v9 = vpop.f32.mrf.mxu1 }
 0x15e   : > { %vm1001_vm4 = vcmp.gt.f32.partialorder %v1000_v63, 0.0  ;;  %1688 = vst [vmem:[%s2215_s23 + $0x10] sm:$0xff] %v1000_v63  ;;  %v841_v63 = vpop.f32.mrf.mxu0 }
 0x15f   : > { %v1686_v2 = vsel %vm1001_vm4, 1.0, %v2047_v24 }
 0x160   : > { %1687 = vst [vmem:[%s2213_s20 + $0x10] sm:$0xff] %v1686_v2  ;;  %v1011_v5 = vmul.f32 6.6666665, %v1686_v2  ;;  %v1009_v6 = vsub.f32 %v1008_v1, %v1686_v2  ;;  %v842_v1 = vadd.f32 %v2494_v4, %v841_v63 }
 0x162   : > { %v1012_v7 = vadd.f32 %v1011_v5, %v1010_v3  ;;  %v1016_v8 = vadd.f32 %v1009_v6, %v833_v0  ;;  %v1061_v14 = vmul.f32 0.65, %v1009_v6 }
 0x164   : > { %v1053_v10 = vadd.f32 %v1050_v9, %v1016_v8  ;;  %v1067_v12 = vmul.f32 10.0, %v1012_v7  ;;  %v1063_v16 = vmul.f32 0.85, %v1012_v7 }
 0x166   : > { %vm1054_vm5 = vcmp.gt.f32.partialorder %v1053_v10, 0.0  ;;  %1691 = vst [vmem:[%s2215_s23 + $0x18] sm:$0xff] %v1053_v10  ;;  %v1068_v13 = vadd.f32 %v1067_v12, %v1066_v11  ;;  %v844_v0 = vpop.f32.mrf.mxu0 }
 0x167   : > { %v1689_v15 = vsel %vm1054_vm5, 1.0, %v2047_v24  ;;  %v845_v8 = vadd.f32 %v2494_v4, %v844_v0 }
 0x168   : > { %1690 = vst [vmem:[%s2213_s20 + $0x18] sm:$0xff] %v1689_v15  ;;  %v1064_v17 = vmul.f32 6.6666665, %v1689_v15  ;;  %1102 = vmatmul.f32.vlgmr.msrb.gmra.mxu2 %v1068_v13  ;;  %v1062_v18 = vsub.f32 %v1061_v14, %v1689_v15  ;;  %v1119_v20 = vmul.f32 0.9, %v1068_v13 }
 0x16a   : > { %v1065_v19 = vadd.f32 %v1064_v17, %v1063_v16  ;;  %v1069_v37 = vadd.f32 %v1062_v18, %v836_v36  ;;  %v1114_v42 = vmul.f32 0.65, %v1062_v18 }
 0x16c   : > { %v1120_v21 = vmul.f32 10.0, %v1065_v19  ;;  %v1116_v44 = vmul.f32 0.85, %v1065_v19 }
 0x16e   : > { %v1121_v22 = vadd.f32 %v1120_v21, %v1119_v20 }
 0x170   : > { %1155 = vmatmul.f32.vlgmr.msrb.gmra.mxu3 %v1121_v22  ;;  %v1172_v51 = vmul.f32 0.9, %v1121_v22 }
 0x1eb   : > { %v1103_v38 = vpop.f32.mrf.mxu2 }
 0x1ec   : > { %v1106_v40 = vadd.f32 %v1103_v38, %v1069_v37 }
 0x1ee   : > { %vm1107_vm6 = vcmp.gt.f32.partialorder %v1106_v40, 0.0  ;;  %1694 = vst [vmem:[%s2215_s23 + $0x20] sm:$0xff] %v1106_v40 }
 0x1ef   : > { %v1692_v43 = vsel %vm1107_vm6, 1.0, %v2047_v24 }
 0x1f0   : > { %1693 = vst [vmem:[%s2213_s20 + $0x20] sm:$0xff] %v1692_v43  ;;  %v1117_v45 = vmul.f32 6.6666665, %v1692_v43  ;;  %v1115_v46 = vsub.f32 %v1114_v42, %v1692_v43 }
 0x1f2   : > { %v1118_v47 = vadd.f32 %v1117_v45, %v1116_v44  ;;  %v1122_v48 = vadd.f32 %v1115_v46, %v839_v41  ;;  %v1167_v54 = vmul.f32 0.65, %v1115_v46 }
 0x1f3   : > { %v1156_v49 = vpop.f32.mrf.mxu3 }
 0x1f4   : > { %v1159_v50 = vadd.f32 %v1156_v49, %v1122_v48  ;;  %v1173_v52 = vmul.f32 10.0, %v1118_v47  ;;  %v1169_v56 = vmul.f32 0.85, %v1118_v47 }
 0x1f6   : > { %vm1160_vm7 = vcmp.gt.f32.partialorder %v1159_v50, 0.0  ;;  %1697 = vst [vmem:[%s2215_s23 + $0x28] sm:$0xff] %v1159_v50  ;;  %v1174_v53 = vadd.f32 %v1173_v52, %v1172_v51 }
 0x1f7   : > { %v1695_v55 = vsel %vm1160_vm7, 1.0, %v2047_v24 }
 0x1f8   : > { %1696 = vst [vmem:[%s2213_s20 + $0x28] sm:$0xff] %v1695_v55  ;;  %v1170_v57 = vmul.f32 6.6666665, %v1695_v55  ;;  %1208 = vmatmul.f32.vlgmr.msrb.gmra.mxu0 %v1174_v53  ;;  %v1168_v58 = vsub.f32 %v1167_v54, %v1695_v55  ;;  %v1225_v60 = vmul.f32 0.9, %v1174_v53 }
 0x1fa   : > { %v1171_v59 = vadd.f32 %v1170_v57, %v1169_v56  ;;  %v1175_v2 = vadd.f32 %v1168_v58, %v842_v1  ;;  %v1220_v6 = vmul.f32 0.65, %v1168_v58 }
 0x1fc   : > { %v1226_v61 = vmul.f32 10.0, %v1171_v59  ;;  %v1222_v9 = vmul.f32 0.85, %v1171_v59 }
 0x1fe   : > { %v1227_v62 = vadd.f32 %v1226_v61, %v1225_v60 }
 0x200   : > { %1261 = vmatmul.f32.vlgmr.msra.gmra.mxu1 %v1227_v62  ;;  %1275 = vst [vmem:[#allocation6] sm:$0xff] %v1227_v62 }
 0x275   : > { %v1209_v3 = vpop.f32.mrf.mxu0 }
 0x276   : > { %v1212_v5 = vadd.f32 %v1209_v3, %v1175_v2 }
 0x278   : > { %vm1213_vm8 = vcmp.gt.f32.partialorder %v1212_v5, 0.0  ;;  %1700 = vst [vmem:[%s2215_s23 + $0x30] sm:$0xff] %v1212_v5 }
 0x279   : > { %v1698_v7 = vsel %vm1213_vm8, 1.0, %v2047_v24 }
 0x27a   : > { %1699 = vst [vmem:[%s2213_s20 + $0x30] sm:$0xff] %v1698_v7  ;;  %v1223_v10 = vmul.f32 6.6666665, %v1698_v7  ;;  %v1221_v11 = vsub.f32 %v1220_v6, %v1698_v7 }
 0x27c   : > { %v1224_v12 = vadd.f32 %v1223_v10, %v1222_v9  ;;  %v1228_v13 = vadd.f32 %v1221_v11, %v845_v8  ;;  %1273 = vst [vmem:[#allocation4] sm:$0xff] %v1221_v11 }
 0x27d   : > { %v1262_v14 = vpop.f32.mrf.mxu1 }
 0x27e   : > { %1276 = vst [vmem:[#allocation7] sm:$0xff] %v1224_v12  ;;  %v1265_v15 = vadd.f32 %v1262_v14, %v1228_v13 }
 0x27f   : > { %1280 = sbr.rel (%p1704_p13) target bundleno = 649 (0x289), region = 68 }
 0x280   : > { %vm1266_vm9 = vcmp.gt.f32.partialorder %v1265_v15, 0.0  ;;  %1703 = vst [vmem:[%s2215_s23 + $0x38] sm:$0xff] %v1265_v15 }
 0x281   : > { %v1701_v16 = vsel %vm1266_vm9, 1.0, %v2047_v24 }
 0x282   : > { %1702 = vst [vmem:[%s2213_s20 + $0x38] sm:$0xff] %v1701_v16 }
 0x283   : > { %1274 = vst [vmem:[#allocation5] sm:$0xff] %v1701_v16 }
 0x284   : > { %1281 = vst.msk [vmem:[#allocation10] sm:$0xff] %vm767_vm1, %v2523_v30 }
 0x285   : > { %1282 = vst.msk [vmem:[#allocation12] sm:$0xff] %vm767_vm1, %v2530_v34 }
 0x286   : > { %1283 = vst [vmem:[#allocation13] sm:$0xff] %v1221_v11 }
 0x287   : > { %1284 = vst [vmem:[#allocation15] sm:$0xff] %v1227_v62 }
 0x288   : > { %1285 = vst [vmem:[#allocation16] sm:$0xff] %v1224_v12 }
 0x289 PF: > { %s2048_s15 = smov [#allocation10]   ;;  %s1331_s18 = sshll.u32 %s2643_s12, 4  ;;  %s1332_s18 = int_to_ptr.hbm [resolvable:$true] %s1331_s18 }
 0x28a   : > { %s1329_s20 = sshll.u32 %s2048_s15, 4  ;;  %s1359_s13 = sshll.u32 %s2645_s14, 4  ;;  %s1330_s20 = int_to_ptr.vmem [resolvable:$true] %s1329_s20  ;;  %s1360_s13 = int_to_ptr.hbm [resolvable:$true] %s1359_s13 }
 0x28b   : > { %1723 = dma.vmem_to_hbm [thread:$0]  (%p2176_p2), %s1330_s20, 128, %s1332_s18, [#allocation11]  }
 0x28c   : > { %s2049_s30 = smov [#allocation13]   ;;  %s1720_s25 = sshll.u32 %s2037_s24, 6 }
 0x28d   : > { %s1357_s21 = sshll.u32 %s2049_s30, 4  ;;  %s1312_s29 = sshll.u32 %s2215_s23, 4  ;;  %s1358_s21 = int_to_ptr.vmem [resolvable:$true] %s1357_s21  ;;  %s1313_s29 = int_to_ptr.vmem [resolvable:$true] %s1312_s29 }
 0x28e   : > { %1727 = dma.vmem_to_hbm [thread:$0]  (%p2176_p2), %s1358_s21, 128, %s1360_s13, [#allocation14]  }
 0x28f   : > { %s1311_s16 = scalar_lea.hbm %s2642_s11, %s1720_s25  ;;  %s2675_s20 = sand.u32 1, %s2029_s22  }
 0x290   : > { %s1314_s28 = sshll.u32 %s1311_s16, 4  ;;  %s1295_s18 = scalar_lea.sflag [#allocation9], %s2675_s20  ;;  %s1315_s28 = int_to_ptr.hbm [resolvable:$true] %s1314_s28 }
 0x291   : > { %s1885_s26 = sshra.s32 %s1315_s28, 4  ;;  %s1891_s23 = scalar_lea.hbm %s2642_s11, 192  ;;  %s1886_s26 = int_to_ptr.hbm [resolvable:$true] %s1885_s26 }
 0x292   : > { %s1887_s27 = scalar_lea.hbm %s1886_s26, 64  ;;  %p1892_p5 = scmp.lt.s32.totalorder %s1886_s26, %s2642_s11 }
 0x293   : > { %p1888_p0 = scmp.ne.s32.totalorder %s1886_s26, %s1887_s27  ;;  %p1893_p6 = scmp.lt.s32.totalorder %s1891_s23, %s1887_s27 }
 0x295   : > { %p1889_p1 = pnand %p1888_p0, %p2186_p4  ;;  %p1894_p7 = por %p1893_p6, %p1892_p5 }
 0x297   : > { %p1890_p3 = pneg %p1889_p1 }
 0x299   : > { %p1895_p9 = pnand %p1894_p7, %p1890_p3 }
 0x29b   : > { %1898 = shalt.err (!%p1895_p9)
}
 0x29c   : > { %s2050_s25 = smov 128   ;;  %s2051_s19 = smov 8  }
 0x29d   : > { %1721 = dma.vmem_to_hbm [thread:$0]  (%p2186_p4), %s1313_s29, 1024, %s1315_s28, %s1295_s18, %s2050_s25, %s2050_s25, %s2051_s19  }
 0x29e   : > { %s2676_s20 = sld [smem:[#allocation32_spill]]  ;;  %s2052_s13 = smov [#allocation12]  }
 0x29f   : > { %s1343_s1 = sshll.u32 %s2052_s13, 4  ;;  %s2053_s26 = smov [#allocation15]   ;;  %s1344_s1 = int_to_ptr.vmem [resolvable:$true] %s1343_s1 }
 0x2a0   : > { %s1371_s27 = sshll.u32 %s2053_s26, 4  ;;  %s2677_s21 = sld [smem:[#allocation33_spill]]  ;;  %s1372_s27 = int_to_ptr.vmem [resolvable:$true] %s1371_s27 }
 0x2a1   : > { %s2678_s28 = sld [smem:[#allocation34_spill]]  ;;  %s2054_s25 = smov [#allocation16]  }
 0x2a2   : > { %s1385_s19 = sshll.u32 %s2054_s25, 4  ;;  %s1386_s19 = int_to_ptr.vmem [resolvable:$true] %s1385_s19 }
 0x2a4   : > { %s1345_s30 = sshll.u32 %s2676_s20, 4  ;;  %s1346_s30 = int_to_ptr.hbm [resolvable:$true] %s1345_s30 }
 0x2a5   : > { %1725 = dma.vmem_to_hbm [thread:$0]  (%p2176_p2), %s1344_s1, 128, %s1346_s30, [#allocation11]  }
 0x2a6   : > { %s1373_s2 = sshll.u32 %s2677_s21, 4  ;;  %s1374_s2 = int_to_ptr.hbm [resolvable:$true] %s1373_s2 }
 0x2a7   : > { %1729 = dma.vmem_to_hbm [thread:$0]  (%p2176_p2), %s1372_s27, 128, %s1374_s2, [#allocation14]  }
 0x2a8   : > { %s1387_s18 = sshll.u32 %s2678_s28, 4  ;;  %s1388_s18 = int_to_ptr.hbm [resolvable:$true] %s1387_s18 }
 0x2a9   : > { %1731 = dma.vmem_to_hbm [thread:$0]  (%p2176_p2), %s1386_s19, 128, %s1388_s18, [#allocation17]  }
 0x2aa   : > { %2008 = dma.done.wait (%p2176_p2), [#allocation11], 256  }
 0x2ab   : > { %2010 = vsyncadd (%p2176_p2), [#allocation11], 4294967040 }
 0x2ac   : > { %2012 = dma.done.wait (%p2176_p2), [#allocation14], 256  }
 0x2ad   : > { %2014 = vsyncadd (%p2176_p2), [#allocation14], 4294967040 }
 0x2ae   : > { %2016 = dma.done.wait (%p2176_p2), [#allocation17], 128  }
 0x2af   : > { %2018 = vsyncadd (%p2176_p2), [#allocation17], 4294967168 }
 0x2b0 PF: > { %s2679_s1 = sld [smem:[#allocation25_spill]] }
 0x2b1   : > { %s2680_s2 = sld [smem:[#allocation22_spill]] }
 0x2b6   : > { %p1757_p4 = scmp.ge.s32.totalorder %s2679_s1, 2 }
 0x2b7   : > { %s1435_s16 = sand.u32 1, %s2680_s2  }
 0x2b8   : > { %p1744_p10 = pnand %p1757_p4, %p2193_p8  ;;  %s1436_s20 = scalar_lea.sflag [#allocation9], %s1435_s16 }
 0x2ba   : > { %p1745_p11 = pneg %p1744_p10 }
 0x2bc   : > { %2020 = dma.done.wait (%p1745_p11), %s1436_s20, 1024  }
 0x2bd   : > { %2022 = vsyncadd (%p1745_p11), %s1436_s20, 4294966272  ;;  %s33_s26 = sadd.s32 1, %s2679_s1   ;;  %s2682_s30 = sld [smem:[#allocation23_spill]] }
 0x2be   : > { %p30_p12 = scmp.ge.s32.totalorder %s33_s26, 5   ;;  %s2683_s23 = sld [smem:[#allocation28_spill]] }
 0x2bf   : > { %s2684_s24 = sld [smem:[#allocation24_spill]]  ;;  %s2686_s21 = smov %s2029_s22 }
 0x2c0   : > { %s2685_s25 = sld [smem:[#allocation26_spill]]  ;;  %32 = sbr.rel (!%p30_p12) target bundleno = 14 (0xe), region = 199 }
 0x2c3   : > { %s2687_s22 = smov %s2682_s30 }
 0x2c5   :  { %1442 = vsyncpa [#allocation9], 1 }
 0x2c6   :  { %1444 = vsyncpa [#allocation9 + $0x1], 1 }
 0x2c7   :  { %1445 = vsyncpa [#allocation11], 1 }
 0x2c8   :  { %1446 = vsyncpa [#allocation14], 1 }
 0x2c9   :  { %1447 = vsyncpa [#allocation17], 1 }

</bundles_post_ra>
